<compile_context>
chip_gen: v7x
topology: tpu7x:2x2x1
jax: 0.10.0
libtpu: 0.0.40
codegen_flags: <defaults>
</compile_context>

<pallas_src>
import functools
import math

import numpy as np
import jax
import jax.numpy as jnp
from jax import lax
from jax.experimental import pallas as pl
from jax.experimental.pallas import tpu as pltpu


# ---------------------------------------------------------------------------------------------
# Generic fused convolution kernel: stride-1 conv + InstanceNorm + residual + activation.
# Input/weights bf16, accumulation f32, output bf16.  One grid step = one image x one Cout chunk.
# ---------------------------------------------------------------------------------------------
def _conv_kernel(*refs, Kh, Kw, pt, pl0, Ho, Wo, Wp, MC, nchunks, norm, act, has_res, eps=1e-5):
    if has_res:
        x_ref, w_ref, r_ref, o_ref, xf_ref, acc_ref = refs
    else:
        x_ref, w_ref, o_ref, xf_ref, acc_ref = refs
        r_ref = None
    cin = x_ref.shape[2]
    cb = o_ref.shape[2]

    # -- stage 1: zero-fill the flattened, padded input scratch (f32) and copy the image in.
    #    (in-kernel padding: no host-side jnp.pad, no extra HBM pass)
    xf_ref[...] = jnp.zeros_like(xf_ref)
    if Kw == 1 and pl0 == 0:                       # no horizontal padding -> contiguous copy
        step = max(8, (16384 // max(cin, 1)) // 8 * 8)
        fills = [(pt * Wp + s, s, min(step, Ho * Wo - s)) for s in range(0, Ho * Wo, step)]
    else:                                          # one copy per image row (static, <= 64)
        fills = [((pt + r) * Wp + pl0, r * Wo, Wo) for r in range(Ho)]
    for d0, s0, n in fills:
        xf_ref[d0:d0 + n, :] = x_ref[0, s0:s0 + n, :].astype(jnp.float32)

    # -- stage 2: per-tap MXU matmuls over M-chunks of the flattened spatial dim (f32 accumulate).
    def _chunk(c, carry):
        m0 = c * MC
        a = jnp.zeros((MC, cb), jnp.float32)
        for ky in range(Kh):
            for kx in range(Kw):
                off = ky * Wp + kx
                xs = xf_ref[pl.ds(m0 + off, MC), :].astype(jnp.bfloat16)
                a = a + jnp.dot(xs, w_ref[ky, kx], preferred_element_type=jnp.float32)
        acc_ref[pl.ds(m0, MC), :] = a
        return carry

    if nchunks == 1:
        _chunk(0, 0)
    else:
        lax.fori_loop(0, nchunks, _chunk, 0)

    # -- stage 3: epilogue -- InstanceNorm stats, normalize, residual add, activation, store.
    def _activate(v):
        if act == "lrelu":
            return jnp.where(v >= 0, v, 0.2 * v)
        if act == "relu":
            return jnp.maximum(v, 0.0)
        if act == "tanh":
            return jnp.tanh(v)
        return v

    if Kw == 1 and pl0 == 0:                       # valid rows are contiguous in the accumulator
        ec = max(8, (16384 // cb) // 8 * 8)
        segs = [(s, s, min(ec, Ho * Wo - s)) for s in range(0, Ho * Wo, ec)]
    else:                                          # keep only the first Wo of each Wp-wide group
        segs = [(oy * Wp, oy * Wo, Wo) for oy in range(Ho)]

    if norm:                                       # InstanceNorm2d(affine=False), biased variance
        ssum = jnp.zeros((1, cb), jnp.float32)
        ssq = jnp.zeros((1, cb), jnp.float32)
        for a0, _, n in segs:
            v = acc_ref[a0:a0 + n, :]
            ssum = ssum + jnp.sum(v, axis=0, keepdims=True)
            ssq = ssq + jnp.sum(v * v, axis=0, keepdims=True)
        inv_n = 1.0 / float(Ho * Wo)
        mean = ssum * inv_n
        var = jnp.maximum(ssq * inv_n - mean * mean, 0.0)
        scale = lax.rsqrt(var + eps)
        shift = -mean * scale

    for a0, o0, n in segs:
        v = acc_ref[a0:a0 + n, :]
        if norm:
            v = v * scale + shift
        if has_res:
            v = v + r_ref[0, o0:o0 + n, :].astype(jnp.float32)
        o_ref[0, o0:o0 + n, :] = _activate(v).astype(o_ref.dtype)


def _round_up(a, b):
    return (a + b - 1) // b * b


def _pick_cout_block(kh, kw, cin, cout, cap_bytes=6 * 1024 * 1024):
    blk = cout
    # keep the weight block <= ~6 MiB (double-buffered: ~12 MiB) and a multiple of 128 lanes
    while kh * kw * cin * blk * 2 > cap_bytes and blk % 2 == 0 and (blk // 2) % 128 == 0:
        blk //= 2
    return blk


@functools.lru_cache(maxsize=None)       # one compile per unique config (shared by both fenets)
def _get_conv_fn(N, Ho, Wo, cin, cout, Kh, Kw, pt, pl0, norm, act, has_res):
    Wp = Wo + Kw - 1
    cblk = _pick_cout_block(Kh, Kw, cin, cout)
    MC = min(_round_up(Ho * Wp, 8), max(8, (16384 // cblk) // 8 * 8))
    nchunks = pl.cdiv(Ho * Wp, MC)
    mpad = nchunks * MC
    xf_rows = mpad + (Kh - 1) * Wp + (Kw - 1)

    kernel = functools.partial(
        _conv_kernel, Kh=Kh, Kw=Kw, pt=pt, pl0=pl0, Ho=Ho, Wo=Wo, Wp=Wp,
        MC=MC, nchunks=nchunks, norm=norm, act=act, has_res=has_res)

    in_specs = [
        pl.BlockSpec((1, Ho * Wo, cin), lambda n, j: (n, 0, 0)),
        pl.BlockSpec((Kh, Kw, cin, cblk), lambda n, j: (0, 0, 0, j)),
    ]
    if has_res:
        in_specs.append(pl.BlockSpec((1, Ho * Wo, cblk), lambda n, j: (n, 0, j)))

    # per-kernel VMEM sizing (never the old fixed 100 MiB; always below v7x's 64 MiB physical)
    est = (2 * (Ho * Wo * cin * 2 + Kh * Kw * cin * cblk * 2
                + Ho * Wo * cblk * 2 * (2 if has_res else 1))
           + xf_rows * cin * 4 + mpad * cblk * 4)
    vmem_lim = int(min(56 * 2 ** 20, max(32 * 2 ** 20, est + 12 * 2 ** 20)))

    fn = pl.pallas_call(
        kernel,
        out_shape=jax.ShapeDtypeStruct((N, Ho * Wo, cout), jnp.bfloat16),
        grid=(N, cout // cblk),
        in_specs=in_specs,
        out_specs=pl.BlockSpec((1, Ho * Wo, cblk), lambda n, j: (n, 0, j)),
        scratch_shapes=[pltpu.VMEM((xf_rows, cin), jnp.float32),
                        pltpu.VMEM((mpad, cblk), jnp.float32)],
        compiler_params=pltpu.CompilerParams(
            dimension_semantics=("parallel", "parallel"),
            vmem_limit_bytes=vmem_lim),
    )
    return jax.jit(fn)


# ---------------------------------------------------------------------------------------------
# Weight preparation: stride-2 convs are rewritten as stride-1 convs on a space-to-depth input.
# ---------------------------------------------------------------------------------------------
def _s2d_weight(w, pad):
    w = np.asarray(w)
    k, _, cin, cout = w.shape
    dmin = (0 - pad) // 2
    dmax = (k - 1 - pad) // 2
    kn = dmax - dmin + 1
    wn = np.zeros((kn, kn, 4 * cin, cout), np.float32)
    for ky in range(k):
        dy, a = (ky - pad) // 2, (ky - pad) % 2
        for kx in range(k):
            dx, b = (kx - pad) // 2, (kx - pad) % 2
            ch = (a * 2 + b) * cin
            wn[dy - dmin, dx - dmin, ch:ch + cin, :] = w[ky, kx]
    return jnp.asarray(wn), kn, -dmin


def _prepare_conv(w, stride, pad, norm, act):
    k, _, cin, cout = w.shape
    if stride == 2 and k == 1 and pad == 0:
        mode, kh, kw, pt = "slice2", 1, 1, 0
    elif stride == 2:
        w, kn, pt = _s2d_weight(w, pad)
        mode, kh, kw = "s2d", kn, kn
    else:
        assert stride == 1
        mode, kh, kw, pt = "same", k, k, pad
    return dict(w=jnp.asarray(w).astype(jnp.bfloat16), mode=mode, kh=kh, kw=kw, pt=pt,
                norm=norm, act=act, cout=cout)


def _conv_param(key, cin, cout, k, stride, pad, norm, act):
    std = math.sqrt(2.0 / (k * k * cout))            # kaiming_normal_(mode='fan_out')
    w = std * jax.random.normal(key, (k, k, cin, cout), jnp.float32)
    return _prepare_conv(w, stride, pad, norm, act)


def _space_to_depth(x, H, W):
    N, _, C = x.shape
    a = x.reshape(N, H // 2, 2, W // 2, 2, C)
    a = jnp.transpose(a, (0, 1, 3, 2, 4, 5))
    return a.reshape(N, (H // 2) * (W // 2), 4 * C)


def conv_forward(p, x, hw, residual=None):
    """x: (N, H*W, Cin) bf16 (NHWC flattened).  Returns (y, (Ho, Wo))."""
    N, _, cin = x.shape
    H, W = hw
    if p["mode"] == "s2d":
        x = _space_to_depth(x, H, W)
        H, W, cin = H // 2, W // 2, 4 * cin
    elif p["mode"] == "slice2":                      # 1x1 / stride-2
        x = x.reshape(N, H, W, cin)[:, ::2, ::2, :].reshape(N, (H // 2) * (W // 2), cin)
        H, W = H // 2, W // 2
    fn = _get_conv_fn(N, H, W, cin, p["cout"], p["kh"], p["kw"], p["pt"], p["pt"],
                      p["norm"], p["act"], residual is not None)
    args = (x, p["w"]) if residual is None else (x, p["w"], residual)
    return fn(*args), (H, W)


# ---------------------------------------------------------------------------------------------
# Self attention (Self_Attn_FM): one fused Pallas kernel per image.
# ---------------------------------------------------------------------------------------------
def _attn_kernel(x_ref, wq_ref, wk_ref, wv_ref, g_ref, o_ref):
    x = x_ref[0]                                                          # (HW, C) bf16
    q = jnp.dot(x, wq_ref[...], preferred_element_type=jnp.float32)
    k = jnp.dot(x, wk_ref[...], preferred_element_type=jnp.float32)
    v = jnp.dot(x, wv_ref[...], preferred_element_type=jnp.float32)
    e = lax.dot_general(q.astype(jnp.bfloat16), k.astype(jnp.bfloat16),
                        (((1,), (1,)), ((), ())),
                        preferred_element_type=jnp.float32)               # (HW, HW)
    e = e - jnp.max(e, axis=-1, keepdims=True)
    a = jnp.exp(e)
    a = a * pl.reciprocal(jnp.sum(a, axis=-1, keepdims=True), approx=True)
    out = jnp.dot(a.astype(jnp.bfloat16), v.astype(jnp.bfloat16),
                  preferred_element_type=jnp.float32)                     # (HW, C)
    y = g_ref[...] * out + x.astype(jnp.float32)
    o_ref[0] = y.astype(o_ref.dtype)


@functools.lru_cache(maxsize=None)
def _get_attn_fn(N, HW, C, Cl):
    fn = pl.pallas_call(
        _attn_kernel,
        out_shape=jax.ShapeDtypeStruct((N, HW, C), jnp.bfloat16),
        grid=(N,),
        in_specs=[pl.BlockSpec((1, HW, C), lambda n: (n, 0, 0)),
                  pl.BlockSpec((C, Cl), lambda n: (0, 0)),
                  pl.BlockSpec((C, Cl), lambda n: (0, 0)),
                  pl.BlockSpec((C, C), lambda n: (0, 0)),
                  pl.BlockSpec((1, C), lambda n: (0, 0))],
        out_specs=pl.BlockSpec((1, HW, C), lambda n: (n, 0, 0)),
        compiler_params=pltpu.CompilerParams(dimension_semantics=("parallel",)),
    )
    return jax.jit(fn)


def _attn_param(key, c):
    cl = max(c // 8, 8)
    kq, kk, kv = jax.random.split(key, 3)

    def w(k, ci, co):
        return (math.sqrt(2.0 / co) * jax.random.normal(k, (ci, co), jnp.float32)
                ).astype(jnp.bfloat16)

    return dict(wq=w(kq, c, cl), wk=w(kk, c, cl), wv=w(kv, c, c),
                gamma=jnp.zeros((1, c), jnp.float32))


def attn_forward(p, x, hw):
    N, HW, C = x.shape
    return _get_attn_fn(N, HW, C, p["wq"].shape[1])(x, p["wq"], p["wk"], p["wv"], p["gamma"])


# ---------------------------------------------------------------------------------------------
# ResNet(Bottleneck, [3, 4, 6, 3]) with InstanceNorm + LeakyReLU(0.2)  (the spec's fenet).
# ---------------------------------------------------------------------------------------------
def _init_resnet(key):
    ks = iter(jax.random.split(key, 80))
    p = {"begin": [
        _conv_param(next(ks), 3, 64, 7, 1, 3, norm=False, act="lrelu"),
        _conv_param(next(ks), 64, 64, 4, 2, 1, norm=True, act="lrelu"),
        _conv_param(next(ks), 64, 64, 4, 2, 1, norm=True, act="lrelu"),
    ]}
    inplanes = 64

    def make_layer(planes, blocks, stride):
        nonlocal inplanes
        layer = []
        for b in range(blocks):
            s = stride if b == 0 else 1
            blk = {
                "c1": _conv_param(next(ks), inplanes, planes, 1, 1, 0, norm=True, act="lrelu"),
                "c2": _conv_param(next(ks), planes, planes, 3, s, 1, norm=True, act="lrelu"),
                "c3": _conv_param(next(ks), planes, planes * 4, 1, 1, 0, norm=True, act="lrelu"),
            }
            if b == 0 and (s != 1 or inplanes != planes * 4):
                blk["down"] = _conv_param(next(ks), inplanes, planes * 4, 1, s, 0,
                                          norm=True, act="none")
            layer.append(blk)
            inplanes = planes * 4
        return layer

    p["layer1"] = make_layer(64, 3, 1)
    p["layer2"] = make_layer(128, 4, 2)
    p["layer3"] = make_layer(256, 6, 2)
    p["layer4"] = make_layer(512, 3, 2)
    p["last"] = _conv_param(next(ks), 2048, 512, 3, 1, 1, norm=False, act="lrelu")
    return p


def _bottleneck_forward(p, x, hw):
    out, hw1 = conv_forward(p["c1"], x, hw)
    out, hw2 = conv_forward(p["c2"], out, hw1)
    if "down" in p:
        idn, _ = conv_forward(p["down"], x, hw)
    else:
        idn = x
    # bn3 -> += identity -> LeakyReLU(0.2), all fused inside the conv kernel
    out, hw3 = conv_forward(p["c3"], out, hw2, residual=idn)
    return out, hw3


def resnet_forward(p, x, hw):
    h = x
    for cp in p["begin"]:
        h, hw = conv_forward(cp, h, hw)
    for name in ("layer1", "layer2", "layer3", "layer4"):
        for bp in p[name]:
            h, hw = _bottleneck_forward(bp, h, hw)
    h, hw = conv_forward(p["last"], h, hw)
    return h, hw


# ---------------------------------------------------------------------------------------------
# SecondStageNet
# ---------------------------------------------------------------------------------------------
def init_second_stage(key, out_channels=3):
    sc = 32                                       # start_channels forced by the sc*48 concat
    ks = jax.random.split(key, 32)
    return {
        "fenet": _init_resnet(ks[0]),
        "fenet2": _init_resnet(ks[1]),
        "begin": _conv_param(ks[2], 1, sc, 7, 1, 3, norm=False, act="lrelu"),
        "down1": _conv_param(ks[3], sc, sc * 2, 4, 2, 1, norm=True, act="lrelu"),
        "down2": _conv_param(ks[4], sc * 2, sc * 4, 4, 2, 1, norm=True, act="lrelu"),
        "down3": _conv_param(ks[5], sc * 4, sc * 8, 4, 2, 1, norm=True, act="lrelu"),
        "down4": _conv_param(ks[6], sc * 8, sc * 16, 4, 2, 1, norm=True, act="lrelu"),
        "down5": _conv_param(ks[7], sc * 16, sc * 16, 4, 2, 1, norm=True, act="lrelu"),
        "down6": _conv_param(ks[8], sc * 48, sc * 16, 4, 2, 1, norm=True, act="lrelu"),
        "up1": _conv_param(ks[9], sc * 16, sc * 16, 3, 1, 1, norm=True, act="lrelu"),
        "a1": _attn_param(ks[10], sc * 16),
        "up2": _conv_param(ks[11], sc * 32, sc * 16, 3, 1, 1, norm=True, act="lrelu"),
        "a2": _attn_param(ks[12], sc * 16),
        "up3": _conv_param(ks[13], sc * 32, sc * 8, 3, 1, 1, norm=True, act="lrelu"),
        "a3": _attn_param(ks[14], sc * 8),
        "up4": _conv_param(ks[15], sc * 16, sc * 4, 3, 1, 1, norm=True, act="lrelu"),
        "up5": _conv_param(ks[16], sc * 8, sc * 2, 3, 1, 1, norm=True, act="lrelu"),
        "up6": _conv_param(ks[17], sc * 4, sc, 3, 1, 1, norm=True, act="lrelu"),
        "final": _conv_param(ks[18], sc * 2, out_channels, 7, 1, 3, norm=False, act="tanh"),
    }


def _upconv_forward(p, x, hw):
    # TransposeConv2dLayer (assumed): 2x nearest-neighbour upsample then Conv2dLayer.
    N, _, C = x.shape
    H, W = hw
    a = x.reshape(N, H, W, C)
    a = jnp.repeat(jnp.repeat(a, 2, axis=1), 2, axis=2)
    return conv_forward(p, a.reshape(N, 4 * H * W, C), (2 * H, 2 * W))


def second_stage_forward(P, x_nchw, x_last_nchw):
    N, _, H, W = x_nchw.shape

    def to_flat(a):
        return jnp.transpose(a, (0, 2, 3, 1)).reshape(N, H * W, -1).astype(jnp.bfloat16)

    x, xl = to_flat(x_nchw), to_flat(x_last_nchw)
    l = x[:, :, 0:1]                                  # x[:, [0], :, :]

    d0, h0 = conv_forward(P["begin"], l, (H, W))
    d1, h1 = conv_forward(P["down1"], d0, h0)
    d2, h2 = conv_forward(P["down2"], d1, h1)
    d3, h3 = conv_forward(P["down3"], d2, h2)
    d4, h4 = conv_forward(P["down4"], d3, h3)
    d5, h5 = conv_forward(P["down5"], d4, h4)

    gf, _ = resnet_forward(P["fenet"], x, (H, W))
    gf2, _ = resnet_forward(P["fenet2"], xl, (H, W))

    d5_ = jnp.concatenate([d5, gf, gf2], axis=-1)
    d6, h6 = conv_forward(P["down6"], d5_, h5)

    u1, uh1 = _upconv_forward(P["up1"], d6, h6)
    u1 = attn_forward(P["a1"], u1, uh1)
    u1 = jnp.concatenate([u1, d5], axis=-1)
    u2, uh2 = _upconv_forward(P["up2"], u1, uh1)
    u2 = attn_forward(P["a2"], u2, uh2)
    u2 = jnp.concatenate([u2, d4], axis=-1)
    u3, uh3 = _upconv_forward(P["up3"], u2, uh2)
    u3 = attn_forward(P["a3"], u3, uh3)
    u3 = jnp.concatenate([u3, d3], axis=-1)
    u4, uh4 = _upconv_forward(P["up4"], u3, uh3)
    u4 = jnp.concatenate([u4, d2], axis=-1)
    u5, uh5 = _upconv_forward(P["up5"], u4, uh4)
    u5 = jnp.concatenate([u5, d1], axis=-1)
    u6, uh6 = _upconv_forward(P["up6"], u5, uh5)
    u6 = jnp.concatenate([u6, d0], axis=-1)

    y, (Hf, Wf) = conv_forward(P["final"], u6, uh6)
    return jnp.transpose(y.reshape(N, Hf, Wf, -1), (0, 3, 1, 2)).astype(jnp.float32)


# ---------------------------------------------------------------------------------------------
# Small numerical self-test of the fused conv kernel against lax.conv (stride 1 and stride 2).
# ---------------------------------------------------------------------------------------------
def _conv_reference(x_nhwc, w, stride, pad, norm, act, res=None):
    xq = x_nhwc.astype(jnp.bfloat16).astype(jnp.float32)
    wq = w.astype(jnp.bfloat16).astype(jnp.float32)
    y = lax.conv_general_dilated(xq, wq, (stride, stride), [(pad, pad), (pad, pad)],
                                 dimension_numbers=("NHWC", "HWIO", "NHWC"))
    if norm:
        m = jnp.mean(y, axis=(1, 2), keepdims=True)
        v = jnp.mean((y - m) ** 2, axis=(1, 2), keepdims=True)
        y = (y - m) * lax.rsqrt(v + 1e-5)
    if res is not None:
        y = y + res.astype(jnp.float32)
    return jnp.where(y >= 0, y, 0.2 * y)


def _self_test(key):
    k1, k2, k3, k4 = jax.random.split(key, 4)
    N, H, W, cin, cout = 1, 8, 8, 16, 32
    x = jax.random.normal(k1, (N, H, W, cin), jnp.float32)
    xf = x.reshape(N, H * W, cin).astype(jnp.bfloat16)

    # stride-1 3x3 + IN + residual + lrelu
    w = 0.1 * jax.random.normal(k2, (3, 3, cin, cout), jnp.float32)
    res = jax.random.normal(k3, (N, H, W, cout), jnp.float32).astype(jnp.bfloat16)
    p = _prepare_conv(w, 1, 1, True, "lrelu")
    got, _ = conv_forward(p, xf, (H, W), residual=res.reshape(N, H * W, cout))
    ref = _conv_reference(x, w, 1, 1, True, "lrelu", res.astype(jnp.float32))
    assert jnp.allclose(got.astype(jnp.float32).reshape(ref.shape), ref, atol=3e-2, rtol=3e-2)

    # stride-2 4x4 + IN + lrelu (exercises the space-to-depth rewrite)
    w2 = 0.1 * jax.random.normal(k4, (4, 4, cin, cout), jnp.float32)
    p2 = _prepare_conv(w2, 2, 1, True, "lrelu")
    got2, _ = conv_forward(p2, xf, (H, W))
    ref2 = _conv_reference(x, w2, 2, 1, True, "lrelu")
    assert jnp.allclose(got2.astype(jnp.float32).reshape(ref2.shape), ref2, atol=3e-2, rtol=3e-2)


if __name__ == "__main__":
    key = jax.random.PRNGKey(0)
    kt, kp, kx, kl = jax.random.split(key, 4)

    _self_test(kt)

    params = init_second_stage(kp, out_channels=3)

    # 64x64 is the smallest spatial size compatible with the /64 encoder depth of SecondStageNet.
    N, H, W = 1, 64, 64
    x = jax.random.normal(kx, (N, 3, H, W), jnp.float32)
    x_last = jax.random.normal(kl, (N, 3, H, W), jnp.float32)

    y = second_stage_forward(params, x, x_last)
    jax.block_until_ready(y)
    assert y.shape == (N, 3, H, W), y.shape
    assert bool(jnp.all(jnp.isfinite(y)))
    print("KERNEL_OK")
</pallas_src>

<mosaic_0001>
module attributes {stable_mosaic.version = 11 : i64} {
  func.func @_conv_kernel(%arg0: i32, %arg1: i32, %arg2: memref<1x64x16xbf16, #tpu.memory_space<vmem>>, %arg3: memref<3x3x16x32xbf16, #tpu.memory_space<vmem>>, %arg4: memref<1x64x32xbf16, #tpu.memory_space<vmem>>, %arg5: memref<1x64x32xbf16, #tpu.memory_space<vmem>>, %arg6: memref<102x16xf32, #tpu.memory_space<vmem>>, %arg7: memref<80x32xf32, #tpu.memory_space<vmem>>) attributes {dimension_semantics = [#tpu.dimension_semantics<parallel>, #tpu.dimension_semantics<parallel>], iteration_bounds = array<i64: 1, 1>, scalar_prefetch = 0 : i64, scratch_operands = 2 : i64, tpu.core_type = #tpu.core_type<tc>, window_params = [{transform_indices = @transform_0, window_bounds = array<i64: 1, 64, 16>}, {transform_indices = @transform_1, window_bounds = array<i64: 3, 3, 16, 32>}, {transform_indices = @transform_2, window_bounds = array<i64: 1, 64, 32>}, {transform_indices = @transform_3, window_bounds = array<i64: 1, 64, 32>}]} {
    %cst = arith.constant 0.000000e+00 : f32
    %0 = vector.broadcast %cst : f32 to vector<102x16xf32>
    %c0 = arith.constant 0 : index
    %c0_0 = arith.constant 0 : index
    %1 = vector.load %arg6[%c0, %c0_0] : memref<102x16xf32, #tpu.memory_space<vmem>>, vector<102x16xf32>
    tpu.vector_store %arg6[%c0, %c0_0], %0 {strides = array<i32>} : memref<102x16xf32, #tpu.memory_space<vmem>>, vector<102x16xf32>,
    %c0_1 = arith.constant 0 : index
    %c0_2 = arith.constant 0 : index
    %c0_3 = arith.constant 0 : index
    %2 = vector.load %arg2[%c0_1, %c0_2, %c0_3] : memref<1x64x16xbf16, #tpu.memory_space<vmem>>, vector<1x8x16xbf16>
    %3 = vector.shape_cast %2 : vector<1x8x16xbf16> to vector<8x16xbf16>
    %4 = arith.extf %3 : vector<8x16xbf16> to vector<8x16xf32>
    %c11 = arith.constant 11 : index
    %c0_4 = arith.constant 0 : index
    %5 = vector.load %arg6[%c11, %c0_4] : memref<102x16xf32, #tpu.memory_space<vmem>>, vector<8x16xf32>
    tpu.vector_store %arg6[%c11, %c0_4], %4 {strides = array<i32>} : memref<102x16xf32, #tpu.memory_space<vmem>>, vector<8x16xf32>,
    %c0_5 = arith.constant 0 : index
    %c8 = arith.constant 8 : index
    %c0_6 = arith.constant 0 : index
    %6 = vector.load %arg2[%c0_5, %c8, %c0_6] : memref<1x64x16xbf16, #tpu.memory_space<vmem>>, vector<1x8x16xbf16>
    %7 = vector.shape_cast %6 : vector<1x8x16xbf16> to vector<8x16xbf16>
    %8 = arith.extf %7 : vector<8x16xbf16> to vector<8x16xf32>
    %c21 = arith.constant 21 : index
    %c0_7 = arith.constant 0 : index
    %9 = vector.load %arg6[%c21, %c0_7] : memref<102x16xf32, #tpu.memory_space<vmem>>, vector<8x16xf32>
    tpu.vector_store %arg6[%c21, %c0_7], %8 {strides = array<i32>} : memref<102x16xf32, #tpu.memory_space<vmem>>, vector<8x16xf32>,
    %c0_8 = arith.constant 0 : index
    %c16 = arith.constant 16 : index
    %c0_9 = arith.constant 0 : index
    %10 = vector.load %arg2[%c0_8, %c16, %c0_9] : memref<1x64x16xbf16, #tpu.memory_space<vmem>>, vector<1x8x16xbf16>
    %11 = vector.shape_cast %10 : vector<1x8x16xbf16> to vector<8x16xbf16>
    %12 = arith.extf %11 : vector<8x16xbf16> to vector<8x16xf32>
    %c31 = arith.constant 31 : index
    %c0_10 = arith.constant 0 : index
    %13 = vector.load %arg6[%c31, %c0_10] : memref<102x16xf32, #tpu.memory_space<vmem>>, vector<8x16xf32>
    tpu.vector_store %arg6[%c31, %c0_10], %12 {strides = array<i32>} : memref<102x16xf32, #tpu.memory_space<vmem>>, vector<8x16xf32>,
    %c0_11 = arith.constant 0 : index
    %c24 = arith.constant 24 : index
    %c0_12 = arith.constant 0 : index
    %14 = vector.load %arg2[%c0_11, %c24, %c0_12] : memref<1x64x16xbf16, #tpu.memory_space<vmem>>, vector<1x8x16xbf16>
    %15 = vector.shape_cast %14 : vector<1x8x16xbf16> to vector<8x16xbf16>
    %16 = arith.extf %15 : vector<8x16xbf16> to vector<8x16xf32>
    %c41 = arith.constant 41 : index
    %c0_13 = arith.constant 0 : index
    %17 = vector.load %arg6[%c41, %c0_13] : memref<102x16xf32, #tpu.memory_space<vmem>>, vector<8x16xf32>
    tpu.vector_store %arg6[%c41, %c0_13], %16 {strides = array<i32>} : memref<102x16xf32, #tpu.memory_space<vmem>>, vector<8x16xf32>,
    %c0_14 = arith.constant 0 : index
    %c32 = arith.constant 32 : index
    %c0_15 = arith.constant 0 : index
    %18 = vector.load %arg2[%c0_14, %c32, %c0_15] : memref<1x64x16xbf16, #tpu.memory_space<vmem>>, vector<1x8x16xbf16>
    %19 = vector.shape_cast %18 : vector<1x8x16xbf16> to vector<8x16xbf16>
    %20 = arith.extf %19 : vector<8x16xbf16> to vector<8x16xf32>
    %c51 = arith.constant 51 : index
    %c0_16 = arith.constant 0 : index
    %21 = vector.load %arg6[%c51, %c0_16] : memref<102x16xf32, #tpu.memory_space<vmem>>, vector<8x16xf32>
    tpu.vector_store %arg6[%c51, %c0_16], %20 {strides = array<i32>} : memref<102x16xf32, #tpu.memory_space<vmem>>, vector<8x16xf32>,
    %c0_17 = arith.constant 0 : index
    %c40 = arith.constant 40 : index
    %c0_18 = arith.constant 0 : index
    %22 = vector.load %arg2[%c0_17, %c40, %c0_18] : memref<1x64x16xbf16, #tpu.memory_space<vmem>>, vector<1x8x16xbf16>
    %23 = vector.shape_cast %22 : vector<1x8x16xbf16> to vector<8x16xbf16>
    %24 = arith.extf %23 : vector<8x16xbf16> to vector<8x16xf32>
    %c61 = arith.constant 61 : index
    %c0_19 = arith.constant 0 : index
    %25 = vector.load %arg6[%c61, %c0_19] : memref<102x16xf32, #tpu.memory_space<vmem>>, vector<8x16xf32>
    tpu.vector_store %arg6[%c61, %c0_19], %24 {strides = array<i32>} : memref<102x16xf32, #tpu.memory_space<vmem>>, vector<8x16xf32>,
    %c0_20 = arith.constant 0 : index
    %c48 = arith.constant 48 : index
    %c0_21 = arith.constant 0 : index
    %26 = vector.load %arg2[%c0_20, %c48, %c0_21] : memref<1x64x16xbf16, #tpu.memory_space<vmem>>, vector<1x8x16xbf16>
    %27 = vector.shape_cast %26 : vector<1x8x16xbf16> to vector<8x16xbf16>
    %28 = arith.extf %27 : vector<8x16xbf16> to vector<8x16xf32>
    %c71 = arith.constant 71 : index
    %c0_22 = arith.constant 0 : index
    %29 = vector.load %arg6[%c71, %c0_22] : memref<102x16xf32, #tpu.memory_space<vmem>>, vector<8x16xf32>
    tpu.vector_store %arg6[%c71, %c0_22], %28 {strides = array<i32>} : memref<102x16xf32, #tpu.memory_space<vmem>>, vector<8x16xf32>,
    %c0_23 = arith.constant 0 : index
    %c56 = arith.constant 56 : index
    %c0_24 = arith.constant 0 : index
    %30 = vector.load %arg2[%c0_23, %c56, %c0_24] : memref<1x64x16xbf16, #tpu.memory_space<vmem>>, vector<1x8x16xbf16>
    %31 = vector.shape_cast %30 : vector<1x8x16xbf16> to vector<8x16xbf16>
    %32 = arith.extf %31 : vector<8x16xbf16> to vector<8x16xf32>
    %c81 = arith.constant 81 : index
    %c0_25 = arith.constant 0 : index
    %33 = vector.load %arg6[%c81, %c0_25] : memref<102x16xf32, #tpu.memory_space<vmem>>, vector<8x16xf32>
    tpu.vector_store %arg6[%c81, %c0_25], %32 {strides = array<i32>} : memref<102x16xf32, #tpu.memory_space<vmem>>, vector<8x16xf32>,
    %cst_26 = arith.constant 0.000000e+00 : f32
    %34 = vector.broadcast %cst_26 : f32 to vector<80x32xf32>
    %c0_27 = arith.constant 0 : index
    %c0_28 = arith.constant 0 : index
    %35 = vector.load %arg6[%c0_27, %c0_28] : memref<102x16xf32, #tpu.memory_space<vmem>>, vector<80x16xf32>
    %36 = arith.truncf %35 : vector<80x16xf32> to vector<80x16xbf16>
    %c0_29 = arith.constant 0 : index
    %c0_30 = arith.constant 0 : index
    %c0_31 = arith.constant 0 : index
    %c0_32 = arith.constant 0 : index
    %37 = vector.load %arg3[%c0_29, %c0_30, %c0_31, %c0_32] : memref<3x3x16x32xbf16, #tpu.memory_space<vmem>>, vector<1x1x16x32xbf16>
    %38 = vector.shape_cast %37 : vector<1x1x16x32xbf16> to vector<16x32xbf16>
    %cst_33 = arith.constant dense<0.000000e+00> : vector<80x32xf32>
    %39 = tpu.matmul %36, %38, %cst_33 {dimension_numbers = #tpu.dot_dimension_numbers<[1], [0], [0], [1], [0, 0, 1, 1], [], []>} : vector<80x16xbf16>, vector<16x32xbf16>, vector<80x32xf32> -> vector<80x32xf32>
    %40 = arith.addf %34, %39 : vector<80x32xf32>
    %c1 = arith.constant 1 : index
    %c0_34 = arith.constant 0 : index
    %41 = vector.load %arg6[%c1, %c0_34] : memref<102x16xf32, #tpu.memory_space<vmem>>, vector<80x16xf32>
    %42 = arith.truncf %41 : vector<80x16xf32> to vector<80x16xbf16>
    %c0_35 = arith.constant 0 : index
    %c1_36 = arith.constant 1 : index
    %c0_37 = arith.constant 0 : index
    %c0_38 = arith.constant 0 : index
    %43 = vector.load %arg3[%c0_35, %c1_36, %c0_37, %c0_38] : memref<3x3x16x32xbf16, #tpu.memory_space<vmem>>, vector<1x1x16x32xbf16>
    %44 = vector.shape_cast %43 : vector<1x1x16x32xbf16> to vector<16x32xbf16>
    %cst_39 = arith.constant dense<0.000000e+00> : vector<80x32xf32>
    %45 = tpu.matmul %42, %44, %cst_39 {dimension_numbers = #tpu.dot_dimension_numbers<[1], [0], [0], [1], [0, 0, 1, 1], [], []>} : vector<80x16xbf16>, vector<16x32xbf16>, vector<80x32xf32> -> vector<80x32xf32>
    %46 = arith.addf %40, %45 : vector<80x32xf32>
    %c2 = arith.constant 2 : index
    %c0_40 = arith.constant 0 : index
    %47 = vector.load %arg6[%c2, %c0_40] : memref<102x16xf32, #tpu.memory_space<vmem>>, vector<80x16xf32>
    %48 = arith.truncf %47 : vector<80x16xf32> to vector<80x16xbf16>
    %c0_41 = arith.constant 0 : index
    %c2_42 = arith.constant 2 : index
    %c0_43 = arith.constant 0 : index
    %c0_44 = arith.constant 0 : index
    %49 = vector.load %arg3[%c0_41, %c2_42, %c0_43, %c0_44] : memref<3x3x16x32xbf16, #tpu.memory_space<vmem>>, vector<1x1x16x32xbf16>
    %50 = vector.shape_cast %49 : vector<1x1x16x32xbf16> to vector<16x32xbf16>
    %cst_45 = arith.constant dense<0.000000e+00> : vector<80x32xf32>
    %51 = tpu.matmul %48, %50, %cst_45 {dimension_numbers = #tpu.dot_dimension_numbers<[1], [0], [0], [1], [0, 0, 1, 1], [], []>} : vector<80x16xbf16>, vector<16x32xbf16>, vector<80x32xf32> -> vector<80x32xf32>
    %52 = arith.addf %46, %51 : vector<80x32xf32>
    %c10 = arith.constant 10 : index
    %c0_46 = arith.constant 0 : index
    %53 = vector.load %arg6[%c10, %c0_46] : memref<102x16xf32, #tpu.memory_space<vmem>>, vector<80x16xf32>
    %54 = arith.truncf %53 : vector<80x16xf32> to vector<80x16xbf16>
    %c1_47 = arith.constant 1 : index
    %c0_48 = arith.constant 0 : index
    %c0_49 = arith.constant 0 : index
    %c0_50 = arith.constant 0 : index
    %55 = vector.load %arg3[%c1_47, %c0_48, %c0_49, %c0_50] : memref<3x3x16x32xbf16, #tpu.memory_space<vmem>>, vector<1x1x16x32xbf16>
    %56 = vector.shape_cast %55 : vector<1x1x16x32xbf16> to vector<16x32xbf16>
    %cst_51 = arith.constant dense<0.000000e+00> : vector<80x32xf32>
    %57 = tpu.matmul %54, %56, %cst_51 {dimension_numbers = #tpu.dot_dimension_numbers<[1], [0], [0], [1], [0, 0, 1, 1], [], []>} : vector<80x16xbf16>, vector<16x32xbf16>, vector<80x32xf32> -> vector<80x32xf32>
    %58 = arith.addf %52, %57 : vector<80x32xf32>
    %c11_52 = arith.constant 11 : index
    %c0_53 = arith.constant 0 : index
    %59 = vector.load %arg6[%c11_52, %c0_53] : memref<102x16xf32, #tpu.memory_space<vmem>>, vector<80x16xf32>
    %60 = arith.truncf %59 : vector<80x16xf32> to vector<80x16xbf16>
    %c1_54 = arith.constant 1 : index
    %c1_55 = arith.constant 1 : index
    %c0_56 = arith.constant 0 : index
    %c0_57 = arith.constant 0 : index
    %61 = vector.load %arg3[%c1_54, %c1_55, %c0_56, %c0_57] : memref<3x3x16x32xbf16, #tpu.memory_space<vmem>>, vector<1x1x16x32xbf16>
    %62 = vector.shape_cast %61 : vector<1x1x16x32xbf16> to vector<16x32xbf16>
    %cst_58 = arith.constant dense<0.000000e+00> : vector<80x32xf32>
    %63 = tpu.matmul %60, %62, %cst_58 {dimension_numbers = #tpu.dot_dimension_numbers<[1], [0], [0], [1], [0, 0, 1, 1], [], []>} : vector<80x16xbf16>, vector<16x32xbf16>, vector<80x32xf32> -> vector<80x32xf32>
    %64 = arith.addf %58, %63 : vector<80x32xf32>
    %c12 = arith.constant 12 : index
    %c0_59 = arith.constant 0 : index
    %65 = vector.load %arg6[%c12, %c0_59] : memref<102x16xf32, #tpu.memory_space<vmem>>, vector<80x16xf32>
    %66 = arith.truncf %65 : vector<80x16xf32> to vector<80x16xbf16>
    %c1_60 = arith.constant 1 : index
    %c2_61 = arith.constant 2 : index
    %c0_62 = arith.constant 0 : index
    %c0_63 = arith.constant 0 : index
    %67 = vector.load %arg3[%c1_60, %c2_61, %c0_62, %c0_63] : memref<3x3x16x32xbf16, #tpu.memory_space<vmem>>, vector<1x1x16x32xbf16>
    %68 = vector.shape_cast %67 : vector<1x1x16x32xbf16> to vector<16x32xbf16>
    %cst_64 = arith.constant dense<0.000000e+00> : vector<80x32xf32>
    %69 = tpu.matmul %66, %68, %cst_64 {dimension_numbers = #tpu.dot_dimension_numbers<[1], [0], [0], [1], [0, 0, 1, 1], [], []>} : vector<80x16xbf16>, vector<16x32xbf16>, vector<80x32xf32> -> vector<80x32xf32>
    %70 = arith.addf %64, %69 : vector<80x32xf32>
    %c20 = arith.constant 20 : index
    %c0_65 = arith.constant 0 : index
    %71 = vector.load %arg6[%c20, %c0_65] : memref<102x16xf32, #tpu.memory_space<vmem>>, vector<80x16xf32>
    %72 = arith.truncf %71 : vector<80x16xf32> to vector<80x16xbf16>
    %c2_66 = arith.constant 2 : index
    %c0_67 = arith.constant 0 : index
    %c0_68 = arith.constant 0 : index
    %c0_69 = arith.constant 0 : index
    %73 = vector.load %arg3[%c2_66, %c0_67, %c0_68, %c0_69] : memref<3x3x16x32xbf16, #tpu.memory_space<vmem>>, vector<1x1x16x32xbf16>
    %74 = vector.shape_cast %73 : vector<1x1x16x32xbf16> to vector<16x32xbf16>
    %cst_70 = arith.constant dense<0.000000e+00> : vector<80x32xf32>
    %75 = tpu.matmul %72, %74, %cst_70 {dimension_numbers = #tpu.dot_dimension_numbers<[1], [0], [0], [1], [0, 0, 1, 1], [], []>} : vector<80x16xbf16>, vector<16x32xbf16>, vector<80x32xf32> -> vector<80x32xf32>
    %76 = arith.addf %70, %75 : vector<80x32xf32>
    %c21_71 = arith.constant 21 : index
    %c0_72 = arith.constant 0 : index
    %77 = vector.load %arg6[%c21_71, %c0_72] : memref<102x16xf32, #tpu.memory_space<vmem>>, vector<80x16xf32>
    %78 = arith.truncf %77 : vector<80x16xf32> to vector<80x16xbf16>
    %c2_73 = arith.constant 2 : index
    %c1_74 = arith.constant 1 : index
    %c0_75 = arith.constant 0 : index
    %c0_76 = arith.constant 0 : index
    %79 = vector.load %arg3[%c2_73, %c1_74, %c0_75, %c0_76] : memref<3x3x16x32xbf16, #tpu.memory_space<vmem>>, vector<1x1x16x32xbf16>
    %80 = vector.shape_cast %79 : vector<1x1x16x32xbf16> to vector<16x32xbf16>
    %cst_77 = arith.constant dense<0.000000e+00> : vector<80x32xf32>
    %81 = tpu.matmul %78, %80, %cst_77 {dimension_numbers = #tpu.dot_dimension_numbers<[1], [0], [0], [1], [0, 0, 1, 1], [], []>} : vector<80x16xbf16>, vector<16x32xbf16>, vector<80x32xf32> -> vector<80x32xf32>
    %82 = arith.addf %76, %81 : vector<80x32xf32>
    %c22 = arith.constant 22 : index
    %c0_78 = arith.constant 0 : index
    %83 = vector.load %arg6[%c22, %c0_78] : memref<102x16xf32, #tpu.memory_space<vmem>>, vector<80x16xf32>
    %84 = arith.truncf %83 : vector<80x16xf32> to vector<80x16xbf16>
    %c2_79 = arith.constant 2 : index
    %c2_80 = arith.constant 2 : index
    %c0_81 = arith.constant 0 : index
    %c0_82 = arith.constant 0 : index
    %85 = vector.load %arg3[%c2_79, %c2_80, %c0_81, %c0_82] : memref<3x3x16x32xbf16, #tpu.memory_space<vmem>>, vector<1x1x16x32xbf16>
    %86 = vector.shape_cast %85 : vector<1x1x16x32xbf16> to vector<16x32xbf16>
    %cst_83 = arith.constant dense<0.000000e+00> : vector<80x32xf32>
    %87 = tpu.matmul %84, %86, %cst_83 {dimension_numbers = #tpu.dot_dimension_numbers<[1], [0], [0], [1], [0, 0, 1, 1], [], []>} : vector<80x16xbf16>, vector<16x32xbf16>, vector<80x32xf32> -> vector<80x32xf32>
    %88 = arith.addf %82, %87 : vector<80x32xf32>
    %c0_84 = arith.constant 0 : index
    %c0_85 = arith.constant 0 : index
    %89 = vector.load %arg7[%c0_84, %c0_85] : memref<80x32xf32, #tpu.memory_space<vmem>>, vector<80x32xf32>
    tpu.vector_store %arg7[%c0_84, %c0_85], %88 {strides = array<i32>} : memref<80x32xf32, #tpu.memory_space<vmem>>, vector<80x32xf32>,
    %cst_86 = arith.constant 0.000000e+00 : f32
    %90 = vector.broadcast %cst_86 : f32 to vector<1x32xf32>
    %cst_87 = arith.constant 0.000000e+00 : f32
    %91 = vector.broadcast %cst_87 : f32 to vector<1x32xf32>
    %c0_88 = arith.constant 0 : index
    %c0_89 = arith.constant 0 : index
    %92 = vector.load %arg7[%c0_88, %c0_89] : memref<80x32xf32, #tpu.memory_space<vmem>>, vector<8x32xf32>
    %cst_90 = arith.constant dense<0.000000e+00> : vector<32xf32>
    %93 = vector.multi_reduction <add>, %92, %cst_90 [0] : vector<8x32xf32> to vector<32xf32>
    %94 = vector.shape_cast %93 : vector<32xf32> to vector<1x32xf32>
    %95 = arith.addf %90, %94 : vector<1x32xf32>
    %96 = arith.mulf %92, %92 : vector<8x32xf32>
    %cst_91 = arith.constant dense<0.000000e+00> : vector<32xf32>
    %97 = vector.multi_reduction <add>, %96, %cst_91 [0] : vector<8x32xf32> to vector<32xf32>
    %98 = vector.shape_cast %97 : vector<32xf32> to vector<1x32xf32>
    %99 = arith.addf %91, %98 : vector<1x32xf32>
    %c10_92 = arith.constant 10 : index
    %c0_93 = arith.constant 0 : index
    %100 = vector.load %arg7[%c10_92, %c0_93] : memref<80x32xf32, #tpu.memory_space<vmem>>, vector<8x32xf32>
    %cst_94 = arith.constant dense<0.000000e+00> : vector<32xf32>
    %101 = vector.multi_reduction <add>, %100, %cst_94 [0] : vector<8x32xf32> to vector<32xf32>
    %102 = vector.shape_cast %101 : vector<32xf32> to vector<1x32xf32>
    %103 = arith.addf %95, %102 : vector<1x32xf32>
    %104 = arith.mulf %100, %100 : vector<8x32xf32>
    %cst_95 = arith.constant dense<0.000000e+00> : vector<32xf32>
    %105 = vector.multi_reduction <add>, %104, %cst_95 [0] : vector<8x32xf32> to vector<32xf32>
    %106 = vector.shape_cast %105 : vector<32xf32> to vector<1x32xf32>
    %107 = arith.addf %99, %106 : vector<1x32xf32>
    %c20_96 = arith.constant 20 : index
    %c0_97 = arith.constant 0 : index
    %108 = vector.load %arg7[%c20_96, %c0_97] : memref<80x32xf32, #tpu.memory_space<vmem>>, vector<8x32xf32>
    %cst_98 = arith.constant dense<0.000000e+00> : vector<32xf32>
    %109 = vector.multi_reduction <add>, %108, %cst_98 [0] : vector<8x32xf32> to vector<32xf32>
    %110 = vector.shape_cast %109 : vector<32xf32> to vector<1x32xf32>
    %111 = arith.addf %103, %110 : vector<1x32xf32>
    %112 = arith.mulf %108, %108 : vector<8x32xf32>
    %cst_99 = arith.constant dense<0.000000e+00> : vector<32xf32>
    %113 = vector.multi_reduction <add>, %112, %cst_99 [0] : vector<8x32xf32> to vector<32xf32>
    %114 = vector.shape_cast %113 : vector<32xf32> to vector<1x32xf32>
    %115 = arith.addf %107, %114 : vector<1x32xf32>
    %c30 = arith.constant 30 : index
    %c0_100 = arith.constant 0 : index
    %116 = vector.load %arg7[%c30, %c0_100] : memref<80x32xf32, #tpu.memory_space<vmem>>, vector<8x32xf32>
    %cst_101 = arith.constant dense<0.000000e+00> : vector<32xf32>
    %117 = vector.multi_reduction <add>, %116, %cst_101 [0] : vector<8x32xf32> to vector<32xf32>
    %118 = vector.shape_cast %117 : vector<32xf32> to vector<1x32xf32>
    %119 = arith.addf %111, %118 : vector<1x32xf32>
    %120 = arith.mulf %116, %116 : vector<8x32xf32>
    %cst_102 = arith.constant dense<0.000000e+00> : vector<32xf32>
    %121 = vector.multi_reduction <add>, %120, %cst_102 [0] : vector<8x32xf32> to vector<32xf32>
    %122 = vector.shape_cast %121 : vector<32xf32> to vector<1x32xf32>
    %123 = arith.addf %115, %122 : vector<1x32xf32>
    %c40_103 = arith.constant 40 : index
    %c0_104 = arith.constant 0 : index
    %124 = vector.load %arg7[%c40_103, %c0_104] : memref<80x32xf32, #tpu.memory_space<vmem>>, vector<8x32xf32>
    %cst_105 = arith.constant dense<0.000000e+00> : vector<32xf32>
    %125 = vector.multi_reduction <add>, %124, %cst_105 [0] : vector<8x32xf32> to vector<32xf32>
    %126 = vector.shape_cast %125 : vector<32xf32> to vector<1x32xf32>
    %127 = arith.addf %119, %126 : vector<1x32xf32>
    %128 = arith.mulf %124, %124 : vector<8x32xf32>
    %cst_106 = arith.constant dense<0.000000e+00> : vector<32xf32>
    %129 = vector.multi_reduction <add>, %128, %cst_106 [0] : vector<8x32xf32> to vector<32xf32>
    %130 = vector.shape_cast %129 : vector<32xf32> to vector<1x32xf32>
    %131 = arith.addf %123, %130 : vector<1x32xf32>
    %c50 = arith.constant 50 : index
    %c0_107 = arith.constant 0 : index
    %132 = vector.load %arg7[%c50, %c0_107] : memref<80x32xf32, #tpu.memory_space<vmem>>, vector<8x32xf32>
    %cst_108 = arith.constant dense<0.000000e+00> : vector<32xf32>
    %133 = vector.multi_reduction <add>, %132, %cst_108 [0] : vector<8x32xf32> to vector<32xf32>
    %134 = vector.shape_cast %133 : vector<32xf32> to vector<1x32xf32>
    %135 = arith.addf %127, %134 : vector<1x32xf32>
    %136 = arith.mulf %132, %132 : vector<8x32xf32>
    %cst_109 = arith.constant dense<0.000000e+00> : vector<32xf32>
    %137 = vector.multi_reduction <add>, %136, %cst_109 [0] : vector<8x32xf32> to vector<32xf32>
    %138 = vector.shape_cast %137 : vector<32xf32> to vector<1x32xf32>
    %139 = arith.addf %131, %138 : vector<1x32xf32>
    %c60 = arith.constant 60 : index
    %c0_110 = arith.constant 0 : index
    %140 = vector.load %arg7[%c60, %c0_110] : memref<80x32xf32, #tpu.memory_space<vmem>>, vector<8x32xf32>
    %cst_111 = arith.constant dense<0.000000e+00> : vector<32xf32>
    %141 = vector.multi_reduction <add>, %140, %cst_111 [0] : vector<8x32xf32> to vector<32xf32>
    %142 = vector.shape_cast %141 : vector<32xf32> to vector<1x32xf32>
    %143 = arith.addf %135, %142 : vector<1x32xf32>
    %144 = arith.mulf %140, %140 : vector<8x32xf32>
    %cst_112 = arith.constant dense<0.000000e+00> : vector<32xf32>
    %145 = vector.multi_reduction <add>, %144, %cst_112 [0] : vector<8x32xf32> to vector<32xf32>
    %146 = vector.shape_cast %145 : vector<32xf32> to vector<1x32xf32>
    %147 = arith.addf %139, %146 : vector<1x32xf32>
    %c70 = arith.constant 70 : index
    %c0_113 = arith.constant 0 : index
    %148 = vector.load %arg7[%c70, %c0_113] : memref<80x32xf32, #tpu.memory_space<vmem>>, vector<8x32xf32>
    %cst_114 = arith.constant dense<0.000000e+00> : vector<32xf32>
    %149 = vector.multi_reduction <add>, %148, %cst_114 [0] : vector<8x32xf32> to vector<32xf32>
    %150 = vector.shape_cast %149 : vector<32xf32> to vector<1x32xf32>
    %151 = arith.addf %143, %150 : vector<1x32xf32>
    %152 = arith.mulf %148, %148 : vector<8x32xf32>
    %cst_115 = arith.constant dense<0.000000e+00> : vector<32xf32>
    %153 = vector.multi_reduction <add>, %152, %cst_115 [0] : vector<8x32xf32> to vector<32xf32>
    %154 = vector.shape_cast %153 : vector<32xf32> to vector<1x32xf32>
    %155 = arith.addf %147, %154 : vector<1x32xf32>
    %cst_116 = arith.constant 1.562500e-02 : f32
    %156 = vector.broadcast %cst_116 : f32 to vector<1x32xf32>
    %157 = arith.mulf %151, %156 : vector<1x32xf32>
    %cst_117 = arith.constant 1.562500e-02 : f32
    %158 = vector.broadcast %cst_117 : f32 to vector<1x32xf32>
    %159 = arith.mulf %155, %158 : vector<1x32xf32>
    %160 = arith.mulf %157, %157 : vector<1x32xf32>
    %161 = arith.subf %159, %160 : vector<1x32xf32>
    %cst_118 = arith.constant 0.000000e+00 : f32
    %162 = vector.broadcast %cst_118 : f32 to vector<1x32xf32>
    %163 = arith.maximumf %161, %162 : vector<1x32xf32>
    %cst_119 = arith.constant 9.99999974E-6 : f32
    %164 = vector.broadcast %cst_119 : f32 to vector<1x32xf32>
    %165 = arith.addf %163, %164 : vector<1x32xf32>
    %166 = math.rsqrt %165 : vector<1x32xf32>
    %cst_120 = arith.constant 0.000000e+00 : f32
    %167 = vector.broadcast %cst_120 : f32 to vector<1x32xf32>
    %168 = arith.subf %167, %157 : vector<1x32xf32>
    %169 = arith.mulf %168, %166 : vector<1x32xf32>
    %c0_121 = arith.constant 0 : index
    %c0_122 = arith.constant 0 : index
    %170 = vector.load %arg7[%c0_121, %c0_122] : memref<80x32xf32, #tpu.memory_space<vmem>>, vector<8x32xf32>
    %171 = vector.broadcast %166 : vector<1x32xf32> to vector<8x32xf32>
    %172 = arith.mulf %170, %171 : vector<8x32xf32>
    %173 = vector.broadcast %169 : vector<1x32xf32> to vector<8x32xf32>
    %174 = arith.addf %172, %173 : vector<8x32xf32>
    %c0_123 = arith.constant 0 : index
    %c0_124 = arith.constant 0 : index
    %c0_125 = arith.constant 0 : index
    %175 = vector.load %arg4[%c0_123, %c0_124, %c0_125] : memref<1x64x32xbf16, #tpu.memory_space<vmem>>, vector<1x8x32xbf16>
    %176 = vector.shape_cast %175 : vector<1x8x32xbf16> to vector<8x32xbf16>
    %177 = arith.extf %176 : vector<8x32xbf16> to vector<8x32xf32>
    %178 = arith.addf %174, %177 : vector<8x32xf32>
    %cst_126 = arith.constant 0.000000e+00 : f32
    %179 = vector.broadcast %cst_126 : f32 to vector<8x32xf32>
    %180 = arith.cmpf oge, %178, %179 : vector<8x32xf32>
    %cst_127 = arith.constant 2.000000e-01 : f32
    %181 = vector.broadcast %cst_127 : f32 to vector<8x32xf32>
    %182 = arith.mulf %181, %178 : vector<8x32xf32>
    %183 = arith.select %180, %178, %182 : vector<8x32xi1>, vector<8x32xf32>
    %184 = arith.truncf %183 : vector<8x32xf32> to vector<8x32xbf16>
    %c0_128 = arith.constant 0 : index
    %c0_129 = arith.constant 0 : index
    %c0_130 = arith.constant 0 : index
    %185 = vector.load %arg5[%c0_128, %c0_129, %c0_130] : memref<1x64x32xbf16, #tpu.memory_space<vmem>>, vector<1x8x32xbf16>
    %186 = vector.shape_cast %185 : vector<1x8x32xbf16> to vector<8x32xbf16>
    %187 = vector.shape_cast %184 : vector<8x32xbf16> to vector<1x8x32xbf16>
    tpu.vector_store %arg5[%c0_128, %c0_129, %c0_130], %187 {strides = array<i32>} : memref<1x64x32xbf16, #tpu.memory_space<vmem>>, vector<1x8x32xbf16>,
    %c10_131 = arith.constant 10 : index
    %c0_132 = arith.constant 0 : index
    %188 = vector.load %arg7[%c10_131, %c0_132] : memref<80x32xf32, #tpu.memory_space<vmem>>, vector<8x32xf32>
    %189 = vector.broadcast %166 : vector<1x32xf32> to vector<8x32xf32>
    %190 = arith.mulf %188, %189 : vector<8x32xf32>
    %191 = vector.broadcast %169 : vector<1x32xf32> to vector<8x32xf32>
    %192 = arith.addf %190, %191 : vector<8x32xf32>
    %c0_133 = arith.constant 0 : index
    %c8_134 = arith.constant 8 : index
    %c0_135 = arith.constant 0 : index
    %193 = vector.load %arg4[%c0_133, %c8_134, %c0_135] : memref<1x64x32xbf16, #tpu.memory_space<vmem>>, vector<1x8x32xbf16>
    %194 = vector.shape_cast %193 : vector<1x8x32xbf16> to vector<8x32xbf16>
    %195 = arith.extf %194 : vector<8x32xbf16> to vector<8x32xf32>
    %196 = arith.addf %192, %195 : vector<8x32xf32>
    %cst_136 = arith.constant 0.000000e+00 : f32
    %197 = vector.broadcast %cst_136 : f32 to vector<8x32xf32>
    %198 = arith.cmpf oge, %196, %197 : vector<8x32xf32>
    %cst_137 = arith.constant 2.000000e-01 : f32
    %199 = vector.broadcast %cst_137 : f32 to vector<8x32xf32>
    %200 = arith.mulf %199, %196 : vector<8x32xf32>
    %201 = arith.select %198, %196, %200 : vector<8x32xi1>, vector<8x32xf32>
    %202 = arith.truncf %201 : vector<8x32xf32> to vector<8x32xbf16>
    %c0_138 = arith.constant 0 : index
    %c8_139 = arith.constant 8 : index
    %c0_140 = arith.constant 0 : index
    %203 = vector.load %arg5[%c0_138, %c8_139, %c0_140] : memref<1x64x32xbf16, #tpu.memory_space<vmem>>, vector<1x8x32xbf16>
    %204 = vector.shape_cast %203 : vector<1x8x32xbf16> to vector<8x32xbf16>
    %205 = vector.shape_cast %202 : vector<8x32xbf16> to vector<1x8x32xbf16>
    tpu.vector_store %arg5[%c0_138, %c8_139, %c0_140], %205 {strides = array<i32>} : memref<1x64x32xbf16, #tpu.memory_space<vmem>>, vector<1x8x32xbf16>,
    %c20_141 = arith.constant 20 : index
    %c0_142 = arith.constant 0 : index
    %206 = vector.load %arg7[%c20_141, %c0_142] : memref<80x32xf32, #tpu.memory_space<vmem>>, vector<8x32xf32>
    %207 = vector.broadcast %166 : vector<1x32xf32> to vector<8x32xf32>
    %208 = arith.mulf %206, %207 : vector<8x32xf32>
    %209 = vector.broadcast %169 : vector<1x32xf32> to vector<8x32xf32>
    %210 = arith.addf %208, %209 : vector<8x32xf32>
    %c0_143 = arith.constant 0 : index
    %c16_144 = arith.constant 16 : index
    %c0_145 = arith.constant 0 : index
    %211 = vector.load %arg4[%c0_143, %c16_144, %c0_145] : memref<1x64x32xbf16, #tpu.memory_space<vmem>>, vector<1x8x32xbf16>
    %212 = vector.shape_cast %211 : vector<1x8x32xbf16> to vector<8x32xbf16>
    %213 = arith.extf %212 : vector<8x32xbf16> to vector<8x32xf32>
    %214 = arith.addf %210, %213 : vector<8x32xf32>
    %cst_146 = arith.constant 0.000000e+00 : f32
    %215 = vector.broadcast %cst_146 : f32 to vector<8x32xf32>
    %216 = arith.cmpf oge, %214, %215 : vector<8x32xf32>
    %cst_147 = arith.constant 2.000000e-01 : f32
    %217 = vector.broadcast %cst_147 : f32 to vector<8x32xf32>
    %218 = arith.mulf %217, %214 : vector<8x32xf32>
    %219 = arith.select %216, %214, %218 : vector<8x32xi1>, vector<8x32xf32>
    %220 = arith.truncf %219 : vector<8x32xf32> to vector<8x32xbf16>
    %c0_148 = arith.constant 0 : index
    %c16_149 = arith.constant 16 : index
    %c0_150 = arith.constant 0 : index
    %221 = vector.load %arg5[%c0_148, %c16_149, %c0_150] : memref<1x64x32xbf16, #tpu.memory_space<vmem>>, vector<1x8x32xbf16>
    %222 = vector.shape_cast %221 : vector<1x8x32xbf16> to vector<8x32xbf16>
    %223 = vector.shape_cast %220 : vector<8x32xbf16> to vector<1x8x32xbf16>
    tpu.vector_store %arg5[%c0_148, %c16_149, %c0_150], %223 {strides = array<i32>} : memref<1x64x32xbf16, #tpu.memory_space<vmem>>, vector<1x8x32xbf16>,
    %c30_151 = arith.constant 30 : index
    %c0_152 = arith.constant 0 : index
    %224 = vector.load %arg7[%c30_151, %c0_152] : memref<80x32xf32, #tpu.memory_space<vmem>>, vector<8x32xf32>
    %225 = vector.broadcast %166 : vector<1x32xf32> to vector<8x32xf32>
    %226 = arith.mulf %224, %225 : vector<8x32xf32>
    %227 = vector.broadcast %169 : vector<1x32xf32> to vector<8x32xf32>
    %228 = arith.addf %226, %227 : vector<8x32xf32>
    %c0_153 = arith.constant 0 : index
    %c24_154 = arith.constant 24 : index
    %c0_155 = arith.constant 0 : index
    %229 = vector.load %arg4[%c0_153, %c24_154, %c0_155] : memref<1x64x32xbf16, #tpu.memory_space<vmem>>, vector<1x8x32xbf16>
    %230 = vector.shape_cast %229 : vector<1x8x32xbf16> to vector<8x32xbf16>
    %231 = arith.extf %230 : vector<8x32xbf16> to vector<8x32xf32>
    %232 = arith.addf %228, %231 : vector<8x32xf32>
    %cst_156 = arith.constant 0.000000e+00 : f32
    %233 = vector.broadcast %cst_156 : f32 to vector<8x32xf32>
    %234 = arith.cmpf oge, %232, %233 : vector<8x32xf32>
    %cst_157 = arith.constant 2.000000e-01 : f32
    %235 = vector.broadcast %cst_157 : f32 to vector<8x32xf32>
    %236 = arith.mulf %235, %232 : vector<8x32xf32>
    %237 = arith.select %234, %232, %236 : vector<8x32xi1>, vector<8x32xf32>
    %238 = arith.truncf %237 : vector<8x32xf32> to vector<8x32xbf16>
    %c0_158 = arith.constant 0 : index
    %c24_159 = arith.constant 24 : index
    %c0_160 = arith.constant 0 : index
    %239 = vector.load %arg5[%c0_158, %c24_159, %c0_160] : memref<1x64x32xbf16, #tpu.memory_space<vmem>>, vector<1x8x32xbf16>
    %240 = vector.shape_cast %239 : vector<1x8x32xbf16> to vector<8x32xbf16>
    %241 = vector.shape_cast %238 : vector<8x32xbf16> to vector<1x8x32xbf16>
    tpu.vector_store %arg5[%c0_158, %c24_159, %c0_160], %241 {strides = array<i32>} : memref<1x64x32xbf16, #tpu.memory_space<vmem>>, vector<1x8x32xbf16>,
    %c40_161 = arith.constant 40 : index
    %c0_162 = arith.constant 0 : index
    %242 = vector.load %arg7[%c40_161, %c0_162] : memref<80x32xf32, #tpu.memory_space<vmem>>, vector<8x32xf32>
    %243 = vector.broadcast %166 : vector<1x32xf32> to vector<8x32xf32>
    %244 = arith.mulf %242, %243 : vector<8x32xf32>
    %245 = vector.broadcast %169 : vector<1x32xf32> to vector<8x32xf32>
    %246 = arith.addf %244, %245 : vector<8x32xf32>
    %c0_163 = arith.constant 0 : index
    %c32_164 = arith.constant 32 : index
    %c0_165 = arith.constant 0 : index
    %247 = vector.load %arg4[%c0_163, %c32_164, %c0_165] : memref<1x64x32xbf16, #tpu.memory_space<vmem>>, vector<1x8x32xbf16>
    %248 = vector.shape_cast %247 : vector<1x8x32xbf16> to vector<8x32xbf16>
    %249 = arith.extf %248 : vector<8x32xbf16> to vector<8x32xf32>
    %250 = arith.addf %246, %249 : vector<8x32xf32>
    %cst_166 = arith.constant 0.000000e+00 : f32
    %251 = vector.broadcast %cst_166 : f32 to vector<8x32xf32>
    %252 = arith.cmpf oge, %250, %251 : vector<8x32xf32>
    %cst_167 = arith.constant 2.000000e-01 : f32
    %253 = vector.broadcast %cst_167 : f32 to vector<8x32xf32>
    %254 = arith.mulf %253, %250 : vector<8x32xf32>
    %255 = arith.select %252, %250, %254 : vector<8x32xi1>, vector<8x32xf32>
    %256 = arith.truncf %255 : vector<8x32xf32> to vector<8x32xbf16>
    %c0_168 = arith.constant 0 : index
    %c32_169 = arith.constant 32 : index
    %c0_170 = arith.constant 0 : index
    %257 = vector.load %arg5[%c0_168, %c32_169, %c0_170] : memref<1x64x32xbf16, #tpu.memory_space<vmem>>, vector<1x8x32xbf16>
    %258 = vector.shape_cast %257 : vector<1x8x32xbf16> to vector<8x32xbf16>
    %259 = vector.shape_cast %256 : vector<8x32xbf16> to vector<1x8x32xbf16>
    tpu.vector_store %arg5[%c0_168, %c32_169, %c0_170], %259 {strides = array<i32>} : memref<1x64x32xbf16, #tpu.memory_space<vmem>>, vector<1x8x32xbf16>,
    %c50_171 = arith.constant 50 : index
    %c0_172 = arith.constant 0 : index
    %260 = vector.load %arg7[%c50_171, %c0_172] : memref<80x32xf32, #tpu.memory_space<vmem>>, vector<8x32xf32>
    %261 = vector.broadcast %166 : vector<1x32xf32> to vector<8x32xf32>
    %262 = arith.mulf %260, %261 : vector<8x32xf32>
    %263 = vector.broadcast %169 : vector<1x32xf32> to vector<8x32xf32>
    %264 = arith.addf %262, %263 : vector<8x32xf32>
    %c0_173 = arith.constant 0 : index
    %c40_174 = arith.constant 40 : index
    %c0_175 = arith.constant 0 : index
    %265 = vector.load %arg4[%c0_173, %c40_174, %c0_175] : memref<1x64x32xbf16, #tpu.memory_space<vmem>>, vector<1x8x32xbf16>
    %266 = vector.shape_cast %265 : vector<1x8x32xbf16> to vector<8x32xbf16>
    %267 = arith.extf %266 : vector<8x32xbf16> to vector<8x32xf32>
    %268 = arith.addf %264, %267 : vector<8x32xf32>
    %cst_176 = arith.constant 0.000000e+00 : f32
    %269 = vector.broadcast %cst_176 : f32 to vector<8x32xf32>
    %270 = arith.cmpf oge, %268, %269 : vector<8x32xf32>
    %cst_177 = arith.constant 2.000000e-01 : f32
    %271 = vector.broadcast %cst_177 : f32 to vector<8x32xf32>
    %272 = arith.mulf %271, %268 : vector<8x32xf32>
    %273 = arith.select %270, %268, %272 : vector<8x32xi1>, vector<8x32xf32>
    %274 = arith.truncf %273 : vector<8x32xf32> to vector<8x32xbf16>
    %c0_178 = arith.constant 0 : index
    %c40_179 = arith.constant 40 : index
    %c0_180 = arith.constant 0 : index
    %275 = vector.load %arg5[%c0_178, %c40_179, %c0_180] : memref<1x64x32xbf16, #tpu.memory_space<vmem>>, vector<1x8x32xbf16>
    %276 = vector.shape_cast %275 : vector<1x8x32xbf16> to vector<8x32xbf16>
    %277 = vector.shape_cast %274 : vector<8x32xbf16> to vector<1x8x32xbf16>
    tpu.vector_store %arg5[%c0_178, %c40_179, %c0_180], %277 {strides = array<i32>} : memref<1x64x32xbf16, #tpu.memory_space<vmem>>, vector<1x8x32xbf16>,
    %c60_181 = arith.constant 60 : index
    %c0_182 = arith.constant 0 : index
    %278 = vector.load %arg7[%c60_181, %c0_182] : memref<80x32xf32, #tpu.memory_space<vmem>>, vector<8x32xf32>
    %279 = vector.broadcast %166 : vector<1x32xf32> to vector<8x32xf32>
    %280 = arith.mulf %278, %279 : vector<8x32xf32>
    %281 = vector.broadcast %169 : vector<1x32xf32> to vector<8x32xf32>
    %282 = arith.addf %280, %281 : vector<8x32xf32>
    %c0_183 = arith.constant 0 : index
    %c48_184 = arith.constant 48 : index
    %c0_185 = arith.constant 0 : index
    %283 = vector.load %arg4[%c0_183, %c48_184, %c0_185] : memref<1x64x32xbf16, #tpu.memory_space<vmem>>, vector<1x8x32xbf16>
    %284 = vector.shape_cast %283 : vector<1x8x32xbf16> to vector<8x32xbf16>
    %285 = arith.extf %284 : vector<8x32xbf16> to vector<8x32xf32>
    %286 = arith.addf %282, %285 : vector<8x32xf32>
    %cst_186 = arith.constant 0.000000e+00 : f32
    %287 = vector.broadcast %cst_186 : f32 to vector<8x32xf32>
    %288 = arith.cmpf oge, %286, %287 : vector<8x32xf32>
    %cst_187 = arith.constant 2.000000e-01 : f32
    %289 = vector.broadcast %cst_187 : f32 to vector<8x32xf32>
    %290 = arith.mulf %289, %286 : vector<8x32xf32>
    %291 = arith.select %288, %286, %290 : vector<8x32xi1>, vector<8x32xf32>
    %292 = arith.truncf %291 : vector<8x32xf32> to vector<8x32xbf16>
    %c0_188 = arith.constant 0 : index
    %c48_189 = arith.constant 48 : index
    %c0_190 = arith.constant 0 : index
    %293 = vector.load %arg5[%c0_188, %c48_189, %c0_190] : memref<1x64x32xbf16, #tpu.memory_space<vmem>>, vector<1x8x32xbf16>
    %294 = vector.shape_cast %293 : vector<1x8x32xbf16> to vector<8x32xbf16>
    %295 = vector.shape_cast %292 : vector<8x32xbf16> to vector<1x8x32xbf16>
    tpu.vector_store %arg5[%c0_188, %c48_189, %c0_190], %295 {strides = array<i32>} : memref<1x64x32xbf16, #tpu.memory_space<vmem>>, vector<1x8x32xbf16>,
    %c70_191 = arith.constant 70 : index
    %c0_192 = arith.constant 0 : index
    %296 = vector.load %arg7[%c70_191, %c0_192] : memref<80x32xf32, #tpu.memory_space<vmem>>, vector<8x32xf32>
    %297 = vector.broadcast %166 : vector<1x32xf32> to vector<8x32xf32>
    %298 = arith.mulf %296, %297 : vector<8x32xf32>
    %299 = vector.broadcast %169 : vector<1x32xf32> to vector<8x32xf32>
    %300 = arith.addf %298, %299 : vector<8x32xf32>
    %c0_193 = arith.constant 0 : index
    %c56_194 = arith.constant 56 : index
    %c0_195 = arith.constant 0 : index
    %301 = vector.load %arg4[%c0_193, %c56_194, %c0_195] : memref<1x64x32xbf16, #tpu.memory_space<vmem>>, vector<1x8x32xbf16>
    %302 = vector.shape_cast %301 : vector<1x8x32xbf16> to vector<8x32xbf16>
    %303 = arith.extf %302 : vector<8x32xbf16> to vector<8x32xf32>
    %304 = arith.addf %300, %303 : vector<8x32xf32>
    %cst_196 = arith.constant 0.000000e+00 : f32
    %305 = vector.broadcast %cst_196 : f32 to vector<8x32xf32>
    %306 = arith.cmpf oge, %304, %305 : vector<8x32xf32>
    %cst_197 = arith.constant 2.000000e-01 : f32
    %307 = vector.broadcast %cst_197 : f32 to vector<8x32xf32>
    %308 = arith.mulf %307, %304 : vector<8x32xf32>
    %309 = arith.select %306, %304, %308 : vector<8x32xi1>, vector<8x32xf32>
    %310 = arith.truncf %309 : vector<8x32xf32> to vector<8x32xbf16>
    %c0_198 = arith.constant 0 : index
    %c56_199 = arith.constant 56 : index
    %c0_200 = arith.constant 0 : index
    %311 = vector.load %arg5[%c0_198, %c56_199, %c0_200] : memref<1x64x32xbf16, #tpu.memory_space<vmem>>, vector<1x8x32xbf16>
    %312 = vector.shape_cast %311 : vector<1x8x32xbf16> to vector<8x32xbf16>
    %313 = vector.shape_cast %310 : vector<8x32xbf16> to vector<1x8x32xbf16>
    tpu.vector_store %arg5[%c0_198, %c56_199, %c0_200], %313 {strides = array<i32>} : memref<1x64x32xbf16, #tpu.memory_space<vmem>>, vector<1x8x32xbf16>,
    return
  }
  func.func @transform_0(%arg0: i32, %arg1: i32) -> (i32, i32, i32) {
    %c0_i32 = arith.constant 0 : i32
    %c0_i32_0 = arith.constant 0 : i32
    %c0_i32_1 = arith.constant 0 : i32
    return %arg0, %c0_i32, %c0_i32_0 : i32, i32, i32
  }
  func.func @transform_1(%arg0: i32, %arg1: i32) -> (i32, i32, i32, i32) {
    %c0_i32 = arith.constant 0 : i32
    %c0_i32_0 = arith.constant 0 : i32
    %c0_i32_1 = arith.constant 0 : i32
    %c0_i32_2 = arith.constant 0 : i32
    return %c0_i32, %c0_i32_0, %c0_i32_1, %arg1 : i32, i32, i32, i32
  }
  func.func @transform_2(%arg0: i32, %arg1: i32) -> (i32, i32, i32) {
    %c0_i32 = arith.constant 0 : i32
    %c0_i32_0 = arith.constant 0 : i32
    return %arg0, %c0_i32, %arg1 : i32, i32, i32
  }
  func.func @transform_3(%arg0: i32, %arg1: i32) -> (i32, i32, i32) {
    %c0_i32 = arith.constant 0 : i32
    %c0_i32_0 = arith.constant 0 : i32
    return %arg0, %c0_i32, %arg1 : i32, i32, i32
  }
}

</mosaic_0001>

<bundles_post_ra>
// kernel: tpu_custom_call.1
= control target key start
LH: loop header
LB: loop body
LE: loop exit
PB: predicated region body
PF: predicated region fallthrough
CT: control target
= control target key end

     0   :  { %vm15_vm0 = vcmask 130048   ;;  %vm28_vm1 = vcmask 128000   ;;  %v1893_v0 = vmov 0.0   ;;  %vm1894_vm2 = vmmov 0   ;;  %s2259_s1 = inlined_call_operand.vmem [shape: bf16[3,3,16,32], index: 1, kind: input, shape index: {}]   ;;  %s2260_s0 = inlined_call_operand.vmem [shape: bf16[1,64,16], index: 0, kind: input, shape index: {}]   ;;  %s2261_s2 = inlined_call_operand.vmem [shape: bf16[1,64,32], index: 2, kind: input, shape index: {}]   ;;  %s2262_s3 = inlined_call_operand.vmem [shape: bf16[1,64,32], index: 3, kind: output, shape index: {}]  }
   0x1   :  { %1618 = vmatprep.subr.bf16.mxu0 %v1893_v0  ;;  %1530 = vmatprep.subr.bf16.mxu1 %v1893_v0  ;;  %v1920_v1 = vld [vmem:[%s2259_s1 + $0x20] sm:$0xff]   ;;  %16 = vst.msk [vmem:[#allocation2] sm:$0xff] %vm15_vm0, %v1893_v0  ;;  %17 = vst.msk [vmem:[#allocation2 + $0x8] sm:$0xff] %vm15_vm0, %v1893_v0  ;;  %v1883_v2 = vld [vmem:[%s2259_s1 + $0x8] sm:$0xff]   ;;  %vm1131_vm3 = vcmask 261120   ;;  %vm1304_vm4 = vcmask 257024  }
   0x2   :  { %18 = vst.msk [vmem:[#allocation2 + $0x10] sm:$0xff] %vm15_vm0, %v1893_v0  ;;  %19 = vst.msk [vmem:[#allocation2 + $0x18] sm:$0xff] %vm15_vm0, %v1893_v0  ;;  %1532 = vmatprep.mubr.msk.bf16.mxu1 %vm1894_vm2, %v1893_v0  ;;  %1620 = vmatprep.mubr.msk.bf16.mxu0 %vm1894_vm2, %v1893_v0  ;;  %v1458_v3 = vld [vmem:[%s2260_s0] sm:$0xff]   ;;  %v1473_v6 = vld [vmem:[%s2260_s0 + $0x8] sm:$0xff]  }
   0x3   :  { %20 = vst.msk [vmem:[#allocation2 + $0x20] sm:$0xff] %vm15_vm0, %v1893_v0  ;;  %21 = vst.msk [vmem:[#allocation2 + $0x28] sm:$0xff] %vm15_vm0, %v1893_v0  ;;  %1619 = vmatpush3.bf16.msra.mxu0 %v1920_v1  ;;  %1531 = vmatpush3.bf16.msra.mxu1 %v1883_v2  ;;  %v1459_v4 = vunpack.c.l.bf16 %v1458_v3  ;;  %v1460_v5 = vunpack.c.h.bf16 %v1458_v3  ;;  %v1463_v7 = vunpack.c.l.bf16 %v1473_v6  ;;  %v1464_v8 = vunpack.c.h.bf16 %v1473_v6  ;;  %v1474_v9 = vld [vmem:[%s2260_s0 + $0x10] sm:$0xff]   ;;  %v1475_v12 = vld [vmem:[%s2260_s0 + $0x18] sm:$0xff]  }
   0x4   :  { %22 = vst.msk [vmem:[#allocation2 + $0x30] sm:$0xff] %vm15_vm0, %v1893_v0  ;;  %23 = vst.msk [vmem:[#allocation2 + $0x38] sm:$0xff] %vm15_vm0, %v1893_v0  ;;  %1640 = vmatprep.subr.bf16.mxu0 %v1893_v0  ;;  %1552 = vmatprep.subr.bf16.mxu1 %v1893_v0  ;;  %v1467_v10 = vunpack.c.l.bf16 %v1474_v9  ;;  %v1468_v11 = vunpack.c.h.bf16 %v1474_v9  ;;  %v1471_v13 = vunpack.c.l.bf16 %v1475_v12  ;;  %v1472_v14 = vunpack.c.h.bf16 %v1475_v12  ;;  %v1884_v16 = vld [vmem:[%s2259_s1 + $0x28] sm:$0xff]   ;;  %v1885_v22 = vld [vmem:[%s2259_s1] sm:$0xff]  }
   0x5   :  { %24 = vst.msk [vmem:[#allocation2 + $0x40] sm:$0xff] %vm15_vm0, %v1893_v0  ;;  %25 = vst.msk [vmem:[#allocation2 + $0x48] sm:$0xff] %vm15_vm0, %v1893_v0  ;;  %v1886_v41 = vld [vmem:[%s2259_s1 + $0x30] sm:$0xff]   ;;  %v1888_v9 = vld [vmem:[%s2259_s1 + $0x38] sm:$0xff]  }
   0x6   :  { %26 = vst.msk [vmem:[#allocation2 + $0x50] sm:$0xff] %vm15_vm0, %v1893_v0  ;;  %27 = vst.msk [vmem:[#allocation2 + $0x58] sm:$0xff] %vm15_vm0, %v1893_v0  ;;  %v1887_v54 = vld [vmem:[%s2259_s1 + $0x10] sm:$0xff]  }
   0x7   :  { %29 = vst.msk [vmem:[#allocation2 + $0x60] sm:$0x3f] %vm28_vm1, %v1893_v0 }
   0x8   :  { %32 = vst.msk [vmem:[#allocation2 + $0xb] sm:$0xff] %vm15_vm0, %v1459_v4  ;;  %35 = vst.msk [vmem:[#allocation2 + $0x15] sm:$0xff] %vm15_vm0, %v1460_v5  ;;  %v71_v15 = vld [vmem:[#allocation2 + $0x1] sm:$0xff] }
   0x9   :  { %38 = vst.msk [vmem:[#allocation2 + $0x1f] sm:$0xff] %vm15_vm0, %v1463_v7  ;;  %41 = vst.msk [vmem:[#allocation2 + $0x29] sm:$0xff] %vm15_vm0, %v1464_v8  ;;  %v54_v48 = vld [vmem:[#allocation2] sm:$0xff] }
   0xa   :  { %44 = vst.msk [vmem:[#allocation2 + $0x33] sm:$0xff] %vm15_vm0, %v1467_v10  ;;  %47 = vst.msk [vmem:[#allocation2 + $0x3d] sm:$0xff] %vm15_vm0, %v1468_v11 }
   0xb   :  { %50 = vst.msk [vmem:[#allocation2 + $0x47] sm:$0xff] %vm15_vm0, %v1471_v13  ;;  %53 = vst.msk [vmem:[#allocation2 + $0x51] sm:$0xff] %vm15_vm0, %v1472_v14  ;;  %v277_v14 = vld [vmem:[#allocation2 + $0x2] sm:$0xff] }
   0xf   :  { %v72_v17 = vld [vmem:[#allocation2 + $0x9] sm:$0xff]  ;;  %v522_v19 = vld [vmem:[#allocation2 + $0x13] sm:$0xff] }
  0x10   :  { %v521_v18 = vld [vmem:[#allocation2 + $0xb] sm:$0xff]  ;;  %v81_v20 = vpack.c.bf16 %v72_v17, %v71_v15  ;;  %v74_v24 = vld [vmem:[#allocation2 + $0x19] sm:$0xff]  ;;  %v524_v26 = vld [vmem:[#allocation2 + $0x23] sm:$0xff] }
  0x11   :  { %v531_v21 = vpack.c.bf16 %v522_v19, %v521_v18  ;;  %v73_v23 = vld [vmem:[#allocation2 + $0x11] sm:$0xff]  ;;  %v523_v25 = vld [vmem:[#allocation2 + $0x1b] sm:$0xff]  ;;  %v76_v30 = vld [vmem:[#allocation2 + $0x29] sm:$0xff] }
  0x12   :  { %1533 = vmatmul.mubr.msk.bf16.vlgmr.msra.gmra.mrb[0].mxu1 %vm15_vm0, %v81_v20  ;;  %v82_v27 = vpack.c.bf16 %v74_v24, %v73_v23  ;;  %v532_v28 = vpack.c.bf16 %v524_v26, %v523_v25  ;;  %v75_v29 = vld [vmem:[#allocation2 + $0x21] sm:$0xff]  ;;  %v525_v31 = vld [vmem:[#allocation2 + $0x2b] sm:$0xff]  ;;  %v526_v32 = vld [vmem:[#allocation2 + $0x33] sm:$0xff] }
  0x13   :  { %1621 = vmatmul.mubr.msk.bf16.vlgmr.msra.gmra.mrb[0].mxu0 %vm15_vm0, %v531_v21  ;;  %1536 = vmatprep.mubr.msk.bf16.mxu1 %vm1894_vm2, %v1893_v0  ;;  %v83_v33 = vpack.c.bf16 %v76_v30, %v75_v29  ;;  %v533_v34 = vpack.c.bf16 %v526_v32, %v525_v31  ;;  %v77_v35 = vld [vmem:[#allocation2 + $0x31] sm:$0xff]  ;;  %v78_v36 = vld [vmem:[#allocation2 + $0x39] sm:$0xff]  ;;  %v79_v42 = vld [vmem:[#allocation2 + $0x41] sm:$0xff] }
  0x14   :  { %1641 = vmatpush3.bf16.msra.mxu0 %v1884_v16  ;;  %1624 = vmatprep.mubr.msk.bf16.mxu0 %vm1894_vm2, %v1893_v0  ;;  %v643_v37 = vld [vmem:[#allocation2 + $0xc] sm:$0xff]  ;;  %v644_v38 = vld [vmem:[#allocation2 + $0x14] sm:$0xff]  ;;  %v84_v39 = vpack.c.bf16 %v78_v36, %v77_v35  ;;  %v645_v44 = vld [vmem:[#allocation2 + $0x1c] sm:$0xff] }
  0x15   :  { %1553 = vmatpush3.bf16.msra.mxu1 %v1885_v22  ;;  %1662 = vmatprep.subr.bf16.mxu0 %v1893_v0  ;;  %v653_v40 = vpack.c.bf16 %v644_v38, %v643_v37  ;;  %v80_v43 = vld [vmem:[#allocation2 + $0x49] sm:$0xff]  ;;  %v648_v51 = vld [vmem:[#allocation2 + $0x34] sm:$0xff]  ;;  %v649_v57 = vld [vmem:[#allocation2 + $0x3c] sm:$0xff]  ;;  %v775_v8 = vpack.c.bf16 %v645_v44, %v644_v38 }
  0x16   :  { %1574 = vmatprep.subr.bf16.mxu1 %v1893_v0  ;;  %v646_v45 = vld [vmem:[#allocation2 + $0x24] sm:$0xff]  ;;  %v85_v46 = vpack.c.bf16 %v80_v43, %v79_v42  ;;  %v647_v50 = vld [vmem:[#allocation2 + $0x2c] sm:$0xff]  ;;  %v57_v56 = vld [vmem:[#allocation2 + $0x18] sm:$0xff]  ;;  %v777_v17 = vpack.c.bf16 %v649_v57, %v648_v51 }
  0x17   :  { %v654_v47 = vpack.c.bf16 %v646_v45, %v645_v44  ;;  %v55_v49 = vld [vmem:[#allocation2 + $0x8] sm:$0xff]  ;;  %v655_v53 = vpack.c.bf16 %v648_v51, %v647_v50  ;;  %v56_v55 = vld [vmem:[#allocation2 + $0x10] sm:$0xff]  ;;  %v58_v61 = vld [vmem:[#allocation2 + $0x20] sm:$0xff]  ;;  %v776_v13 = vpack.c.bf16 %v647_v50, %v646_v45 }
  0x18   :  { %v64_v52 = vpack.c.bf16 %v55_v49, %v54_v48  ;;  %v650_v58 = vld [vmem:[#allocation2 + $0x44] sm:$0xff]  ;;  %v65_v59 = vpack.c.bf16 %v57_v56, %v56_v55  ;;  %v651_v63 = vld [vmem:[#allocation2 + $0x4c] sm:$0xff]  ;;  %v652_v2 = vld [vmem:[#allocation2 + $0x54] sm:$0xff] }
  0x19   :  { %v656_v60 = vpack.c.bf16 %v650_v58, %v649_v57  ;;  %v59_v62 = vld [vmem:[#allocation2 + $0x28] sm:$0xff]  ;;  %v657_v4 = vpack.c.bf16 %v652_v2, %v651_v63  ;;  %v60_v5 = vld [vmem:[#allocation2 + $0x30] sm:$0xff]  ;;  %v61_v6 = vld [vmem:[#allocation2 + $0x38] sm:$0xff]  ;;  %v778_v22 = vpack.c.bf16 %v651_v63, %v650_v58 }
  0x1a   :  { %1537 = vmatmul.mubr.msk.bf16.gmra.mrb[4].mxu1 %vm15_vm0, %v82_v27  ;;  %v66_v3 = vpack.c.bf16 %v59_v62, %v58_v61  ;;  %v67_v7 = vpack.c.bf16 %v61_v6, %v60_v5  ;;  %v62_v10 = vld [vmem:[#allocation2 + $0x40] sm:$0xff]  ;;  %v63_v11 = vld [vmem:[#allocation2 + $0x48] sm:$0xff]  ;;  %v1889_v18 = vld [vmem:[%s2259_s1 + $0x18] sm:$0xff]  }
  0x1b   :  { %1625 = vmatmul.mubr.msk.bf16.gmra.mrb[4].mxu0 %vm15_vm0, %v532_v28  ;;  %1540 = vmatprep.mubr.msk.bf16.mxu1 %vm1894_vm2, %v1893_v0  ;;  %v68_v12 = vpack.c.bf16 %v63_v11, %v62_v10  ;;  %v278_v15 = vld [vmem:[#allocation2 + $0xa] sm:$0xff]  ;;  %v279_v19 = vld [vmem:[#allocation2 + $0x12] sm:$0xff]  ;;  %v280_v20 = vld [vmem:[#allocation2 + $0x1a] sm:$0xff] }
  0x1c   :  { %1628 = vmatprep.mubr.msk.bf16.mxu0 %vm1894_vm2, %v1893_v0  ;;  %v287_v16 = vpack.c.bf16 %v278_v15, %v277_v14  ;;  %v288_v21 = vpack.c.bf16 %v280_v20, %v279_v19  ;;  %v281_v23 = vld [vmem:[#allocation2 + $0x22] sm:$0xff]  ;;  %v282_v24 = vld [vmem:[#allocation2 + $0x2a] sm:$0xff]  ;;  %v283_v28 = vld [vmem:[#allocation2 + $0x32] sm:$0xff]  ;;  %v409_v43 = vpack.c.bf16 %v279_v19, %v278_v15 }
  0x1d   :  { %v774_v25 = vld [vmem:[#allocation2 + $0x5c] sm:$0xff]  ;;  %v289_v26 = vpack.c.bf16 %v282_v24, %v281_v23  ;;  %v286_v36 = vld [vmem:[#allocation2 + $0x4a] sm:$0xff]  ;;  %v411_v51 = vpack.c.bf16 %v283_v28, %v282_v24  ;;  %v408_v56 = vld [vmem:[#allocation2 + $0x52] sm:$0xff] }
  0x1e   :  { %v779_v27 = vpack.c.bf16 %v774_v25, %v652_v2  ;;  %v284_v29 = vld [vmem:[#allocation2 + $0x3a] sm:$0xff]  ;;  %v285_v35 = vld [vmem:[#allocation2 + $0x42] sm:$0xff]  ;;  %v890_v38 = vld [vmem:[#allocation2 + $0x2d] sm:$0xff] }
  0x1f   :  { %v887_v30 = vld [vmem:[#allocation2 + $0x15] sm:$0xff]  ;;  %v888_v31 = vld [vmem:[#allocation2 + $0x1d] sm:$0xff]  ;;  %v290_v32 = vpack.c.bf16 %v284_v29, %v283_v28  ;;  %v889_v37 = vld [vmem:[#allocation2 + $0x25] sm:$0xff] }
  0x20   :  { %v892_v42 = vld [vmem:[#allocation2 + $0x3d] sm:$0xff]  ;;  %v893_v45 = vld [vmem:[#allocation2 + $0x45] sm:$0xff]  ;;  %v895_v49 = vld [vmem:[#allocation2 + $0x55] sm:$0xff] }
  0x21   :  { %v896_v50 = vld [vmem:[#allocation2 + $0x5d] sm:$0xff]  ;;  %v1011_v57 = vld [vmem:[#allocation2 + $0x26] sm:$0xff]  ;;  %v1012_v58 = vld [vmem:[#allocation2 + $0x2e] sm:$0xff] }
  0x22   :  { %1541 = vmatmul.mubr.msk.bf16.gmra.mrb[8].mxu1 %vm15_vm0, %v83_v33  ;;  %v897_v33 = vpack.c.bf16 %v888_v31, %v887_v30  ;;  %v527_v61 = vld [vmem:[#allocation2 + $0x3b] sm:$0xff]  ;;  %v528_v62 = vld [vmem:[#allocation2 + $0x43] sm:$0xff]  ;;  %v529_v5 = vld [vmem:[#allocation2 + $0x4b] sm:$0xff] }
  0x23   :  { %1629 = vmatmul.mubr.msk.bf16.gmra.mrb[8].mxu0 %vm15_vm0, %v533_v34  ;;  %1544 = vmatprep.mubr.msk.bf16.mxu1 %vm1894_vm2, %v1893_v0  ;;  %v1890_v34 = vld [vmem:[%s2259_s1 + $0x40] sm:$0xff]   ;;  %v1013_v63 = vld [vmem:[#allocation2 + $0x36] sm:$0xff] }
  0x24   :  { %1642 = vmatprep.mubr.msk.bf16.mxu0 %vm1894_vm2, %v1893_v0  ;;  %v1014_v2 = vld [vmem:[#allocation2 + $0x3e] sm:$0xff]  ;;  %v530_v6 = vld [vmem:[#allocation2 + $0x53] sm:$0xff] }
  0x25   :  { %v1017_v11 = vld [vmem:[#allocation2 + $0x56] sm:$0xff] }
  0x2a   :  { %1545 = vmatmul.mubr.msk.bf16.gmra.mrb[12].mxu1 %vm15_vm0, %v84_v39  ;;  %v291_v39 = vpack.c.bf16 %v286_v36, %v285_v35 }
  0x2b   :  { %1643 = vmatmul.mubr.msk.bf16.vlgmr.msra.gmra.mrb[0].mxu0 %vm15_vm0, %v653_v40  ;;  %1548 = vmatprep.mubr.msk.bf16.mxu1 %vm1894_vm2, %v1893_v0  ;;  %v898_v40 = vpack.c.bf16 %v890_v38, %v889_v37 }
  0x2c   :  { %1663 = vmatpush3.bf16.msra.mxu0 %v1886_v41  ;;  %1646 = vmatprep.mubr.msk.bf16.mxu0 %vm1894_vm2, %v1893_v0  ;;  %v891_v41 = vld [vmem:[#allocation2 + $0x35] sm:$0xff] }
  0x2d   :  { %1684 = vmatprep.subr.bf16.mxu0 %v1893_v0  ;;  %v899_v44 = vpack.c.bf16 %v892_v42, %v891_v41 }
  0x32   :  { %1549 = vmatmul.mubr.msk.bf16.gmra.mrb[16].mxu1 %vm15_vm0, %v85_v46  ;;  %v894_v46 = vld [vmem:[#allocation2 + $0x4d] sm:$0xff] }
  0x33   :  { %1647 = vmatmul.mubr.msk.bf16.gmra.mrb[4].mxu0 %vm15_vm0, %v654_v47  ;;  %1554 = vmatprep.mubr.msk.bf16.mxu1 %vm1894_vm2, %v1893_v0  ;;  %v410_v47 = vpack.c.bf16 %v281_v23, %v280_v20  ;;  %v900_v48 = vpack.c.bf16 %v894_v46, %v893_v45 }
  0x34   :  { %1650 = vmatprep.mubr.msk.bf16.mxu0 %vm1894_vm2, %v1893_v0 }
  0x3a   :  { %1555 = vmatmul.mubr.msk.bf16.vlgmr.msra.gmra.mrb[0].mxu1 %vm15_vm0, %v64_v52  ;;  %v901_v52 = vpack.c.bf16 %v896_v50, %v895_v49 }
  0x3b   :  { %1651 = vmatmul.mubr.msk.bf16.gmra.mrb[8].mxu0 %vm15_vm0, %v655_v53  ;;  %1558 = vmatprep.mubr.msk.bf16.mxu1 %vm1894_vm2, %v1893_v0  ;;  %v1010_v53 = vld [vmem:[#allocation2 + $0x1e] sm:$0xff] }
  0x3c   :  { %1654 = vmatprep.mubr.msk.bf16.mxu0 %vm1894_vm2, %v1893_v0  ;;  %1575 = vmatpush3.bf16.msra.mxu1 %v1887_v54  ;;  %v412_v54 = vpack.c.bf16 %v285_v35, %v284_v29 }
  0x3d   :  { %1596 = vmatprep.subr.bf16.mxu1 %v1893_v0 }
  0x42   :  { %1559 = vmatmul.mubr.msk.bf16.gmra.mrb[4].mxu1 %vm15_vm0, %v65_v59  ;;  %v413_v59 = vpack.c.bf16 %v408_v56, %v286_v36 }
  0x43   :  { %1655 = vmatmul.mubr.msk.bf16.gmra.mrb[12].mxu0 %vm15_vm0, %v656_v60  ;;  %1562 = vmatprep.mubr.msk.bf16.mxu1 %vm1894_vm2, %v1893_v0  ;;  %v1020_v60 = vpack.c.bf16 %v1012_v58, %v1011_v57 }
  0x44   :  { %1658 = vmatprep.mubr.msk.bf16.mxu0 %vm1894_vm2, %v1893_v0 }
  0x4a   :  { %1563 = vmatmul.mubr.msk.bf16.gmra.mrb[8].mxu1 %vm15_vm0, %v66_v3  ;;  %v534_v3 = vpack.c.bf16 %v528_v62, %v527_v61 }
  0x4b   :  { %1659 = vmatmul.mubr.msk.bf16.gmra.mrb[16].mxu0 %vm15_vm0, %v657_v4  ;;  %1566 = vmatprep.mubr.msk.bf16.mxu1 %vm1894_vm2, %v1893_v0  ;;  %v1021_v4 = vpack.c.bf16 %v1014_v2, %v1013_v63 }
  0x4c   :  { %1664 = vmatprep.mubr.msk.bf16.mxu0 %vm1894_vm2, %v1893_v0 }
  0x52   :  { %1567 = vmatmul.mubr.msk.bf16.gmra.mrb[12].mxu1 %vm15_vm0, %v67_v7  ;;  %v1015_v7 = vld [vmem:[#allocation2 + $0x46] sm:$0xff] }
  0x53   :  { %1665 = vmatmul.mubr.msk.bf16.vlgmr.msra.gmra.mrb[0].mxu0 %vm15_vm0, %v775_v8  ;;  %1570 = vmatprep.mubr.msk.bf16.mxu1 %vm1894_vm2, %v1893_v0  ;;  %v1016_v8 = vld [vmem:[#allocation2 + $0x4e] sm:$0xff] }
  0x54   :  { %1685 = vmatpush3.bf16.msra.mxu0 %v1888_v9  ;;  %1668 = vmatprep.mubr.msk.bf16.mxu0 %vm1894_vm2, %v1893_v0  ;;  %v535_v9 = vpack.c.bf16 %v530_v6, %v529_v5  ;;  %v1022_v10 = vpack.c.bf16 %v1016_v8, %v1015_v7 }
  0x55   :  { %1706 = vmatprep.subr.bf16.mxu0 %v1893_v0 }
  0x5a   :  { %1571 = vmatmul.mubr.msk.bf16.gmra.mrb[16].mxu1 %vm15_vm0, %v68_v12  ;;  %v1018_v12 = vld [vmem:[#allocation2 + $0x5e] sm:$0xff] }
  0x5b   :  { %1669 = vmatmul.mubr.msk.bf16.gmra.mrb[4].mxu0 %vm15_vm0, %v776_v13  ;;  %1576 = vmatprep.mubr.msk.bf16.mxu1 %vm1894_vm2, %v1893_v0  ;;  %v1023_v13 = vpack.c.bf16 %v1018_v12, %v1017_v11 }
  0x5c   :  { %1672 = vmatprep.mubr.msk.bf16.mxu0 %vm1894_vm2, %v1893_v0 }
  0x62   :  { %1577 = vmatmul.mubr.msk.bf16.vlgmr.msra.gmra.mrb[0].mxu1 %vm15_vm0, %v287_v16 }
  0x63   :  { %1673 = vmatmul.mubr.msk.bf16.gmra.mrb[8].mxu0 %vm15_vm0, %v777_v17  ;;  %1580 = vmatprep.mubr.msk.bf16.mxu1 %vm1894_vm2, %v1893_v0 }
  0x64   :  { %1676 = vmatprep.mubr.msk.bf16.mxu0 %vm1894_vm2, %v1893_v0  ;;  %1597 = vmatpush3.bf16.msra.mxu1 %v1889_v18 }
  0x65   :  { %1728 = vmatprep.subr.bf16.mxu1 %v1893_v0 }
  0x6a   :  { %1581 = vmatmul.mubr.msk.bf16.gmra.mrb[4].mxu1 %vm15_vm0, %v288_v21 }
  0x6b   :  { %1677 = vmatmul.mubr.msk.bf16.gmra.mrb[12].mxu0 %vm15_vm0, %v778_v22  ;;  %1584 = vmatprep.mubr.msk.bf16.mxu1 %vm1894_vm2, %v1893_v0 }
  0x6c   :  { %1680 = vmatprep.mubr.msk.bf16.mxu0 %vm1894_vm2, %v1893_v0 }
  0x72   :  { %1585 = vmatmul.mubr.msk.bf16.gmra.mrb[8].mxu1 %vm15_vm0, %v289_v26 }
  0x73   :  { %1681 = vmatmul.mubr.msk.bf16.gmra.mrb[16].mxu0 %vm15_vm0, %v779_v27  ;;  %1588 = vmatprep.mubr.msk.bf16.mxu1 %vm1894_vm2, %v1893_v0 }
  0x74   :  { %1686 = vmatprep.mubr.msk.bf16.mxu0 %vm1894_vm2, %v1893_v0 }
  0x7a   :  { %1589 = vmatmul.mubr.msk.bf16.gmra.mrb[12].mxu1 %vm15_vm0, %v290_v32 }
  0x7b   :  { %1687 = vmatmul.mubr.msk.bf16.vlgmr.msra.gmra.mrb[0].mxu0 %vm15_vm0, %v897_v33  ;;  %1592 = vmatprep.mubr.msk.bf16.mxu1 %vm1894_vm2, %v1893_v0 }
  0x7c   :  { %1707 = vmatpush3.bf16.msra.mxu0 %v1890_v34  ;;  %1690 = vmatprep.mubr.msk.bf16.mxu0 %vm1894_vm2, %v1893_v0 }
  0x82   :  { %1593 = vmatmul.mubr.msk.bf16.gmra.mrb[16].mxu1 %vm15_vm0, %v291_v39 }
  0x83   :  { %1691 = vmatmul.mubr.msk.bf16.gmra.mrb[4].mxu0 %vm15_vm0, %v898_v40  ;;  %1598 = vmatprep.mubr.msk.bf16.mxu1 %vm1894_vm2, %v1893_v0 }
  0x84   :  { %1694 = vmatprep.mubr.msk.bf16.mxu0 %vm1894_vm2, %v1893_v0 }
  0x8a   :  { %1599 = vmatmul.mubr.msk.bf16.vlgmr.msra.gmra.mrb[0].mxu1 %vm15_vm0, %v409_v43 }
  0x8b   :  { %1695 = vmatmul.mubr.msk.bf16.gmra.mrb[8].mxu0 %vm15_vm0, %v899_v44  ;;  %1602 = vmatprep.mubr.msk.bf16.mxu1 %vm1894_vm2, %v1893_v0 }
  0x8c   :  { %1698 = vmatprep.mubr.msk.bf16.mxu0 %vm1894_vm2, %v1893_v0  ;;  %1729 = vmatpush3.bf16.msra.mxu1 %v1920_v1  ;;  %v1009_v1 = vld [vmem:[#allocation2 + $0x16] sm:$0xff] }
  0x8d   :  { %v1019_v55 = vpack.c.bf16 %v1010_v53, %v1009_v1 }
  0x92   :  { %1603 = vmatmul.mubr.msk.bf16.gmra.mrb[4].mxu1 %vm15_vm0, %v410_v47 }
  0x93   :  { %1699 = vmatmul.mubr.msk.bf16.gmra.mrb[12].mxu0 %vm15_vm0, %v900_v48  ;;  %1606 = vmatprep.mubr.msk.bf16.mxu1 %vm1894_vm2, %v1893_v0 }
  0x94   :  { %1702 = vmatprep.mubr.msk.bf16.mxu0 %vm1894_vm2, %v1893_v0 }
  0x9a   :  { %1607 = vmatmul.mubr.msk.bf16.gmra.mrb[8].mxu1 %vm15_vm0, %v411_v51 }
  0x9b   :  { %1703 = vmatmul.mubr.msk.bf16.gmra.mrb[16].mxu0 %vm15_vm0, %v901_v52  ;;  %1610 = vmatprep.mubr.msk.bf16.mxu1 %vm1894_vm2, %v1893_v0 }
  0x9c   :  { %1708 = vmatprep.mubr.msk.bf16.mxu0 %vm1894_vm2, %v1893_v0 }
  0xa2   :  { %1611 = vmatmul.mubr.msk.bf16.gmra.mrb[12].mxu1 %vm15_vm0, %v412_v54 }
  0xa3   :  { %1709 = vmatmul.mubr.msk.bf16.vlgmr.msra.gmra.mrb[0].mxu0 %vm15_vm0, %v1019_v55  ;;  %1614 = vmatprep.mubr.msk.bf16.mxu1 %vm1894_vm2, %v1893_v0 }
  0xa4   :  { %1712 = vmatprep.mubr.msk.bf16.mxu0 %vm1894_vm2, %v1893_v0 }
  0xaa   :  { %1615 = vmatmul.mubr.msk.bf16.gmra.mrb[16].mxu1 %vm15_vm0, %v413_v59 }
  0xab   :  { %1713 = vmatmul.mubr.msk.bf16.gmra.mrb[4].mxu0 %vm15_vm0, %v1020_v60  ;;  %1632 = vmatprep.mubr.msk.bf16.mxu1 %vm1894_vm2, %v1893_v0 }
  0xac   :  { %1716 = vmatprep.mubr.msk.bf16.mxu0 %vm1894_vm2, %v1893_v0 }
  0xb2   :  { %1633 = vmatmul.mubr.msk.bf16.vlgmr.msra.gmra.mrb[12].mxu1 %vm15_vm0, %v534_v3 }
  0xb3   :  { %1717 = vmatmul.mubr.msk.bf16.gmra.mrb[8].mxu0 %vm15_vm0, %v1021_v4  ;;  %1636 = vmatprep.mubr.msk.bf16.mxu1 %vm1894_vm2, %v1893_v0 }
  0xb4   :  { %1720 = vmatprep.mubr.msk.bf16.mxu0 %vm1894_vm2, %v1893_v0 }
  0xba   :  { %1637 = vmatmul.mubr.msk.bf16.gmra.mrb[16].mxu1 %vm15_vm0, %v535_v9 }
  0xbb   :  { %1721 = vmatmul.mubr.msk.bf16.gmra.mrb[12].mxu0 %vm15_vm0, %v1022_v10 }
  0xbc   :  { %1724 = vmatprep.mubr.msk.bf16.mxu0 %vm1894_vm2, %v1893_v0 }
  0xc3   :  { %1725 = vmatmul.mubr.msk.bf16.gmra.mrb[16].mxu0 %vm15_vm0, %v1023_v13 }
 0x15d   :  { %v472_v14 = vpop.f32.mrb[0].mxu1 }
 0x15e   :  { %v1600_v15 = vpop.f32.mrb[1].mxu1 }
 0x15f   :  { %v475_v16 = vpop.f32.mrb[2].mxu1 }
 0x160   :  { %v1601_v17 = vpop.f32.mrb[3].mxu1 }
 0x165   :  { %v480_v18 = vpop.f32.mrb[4].mxu1 }
 0x166   :  { %v1604_v19 = vpop.f32.mrb[5].mxu1 }
 0x167   :  { %v483_v20 = vpop.f32.mrb[6].mxu1 }
 0x168   :  { %v1605_v21 = vpop.f32.mrb[7].mxu1 }
 0x16d   :  { %v488_v22 = vpop.f32.mrb[8].mxu1 }
 0x16e   :  { %v1608_v23 = vpop.f32.mrb[9].mxu1 }
 0x16f   :  { %v491_v24 = vpop.f32.mrb[10].mxu1 }
 0x170   :  { %v1609_v25 = vpop.f32.mrb[11].mxu1 }
 0x176   :  { %v1082_v26 = vpop.f32.mrb[0].mxu0 }
 0x177   :  { %v1730_v0 = vadd.f32 %v1082_v26, %v472_v14  ;;  %v1710_v27 = vpop.f32.mrb[1].mxu0 }
 0x178   :  { %v1085_v28 = vpop.f32.mrb[2].mxu0 }
 0x179   :  { %1132 = vst.msk [vmem:[#allocation3] sm:$0xff] %vm1131_vm3, %v1730_v0  ;;  %v1731_v29 = vadd.f32 %v1085_v28, %v475_v16  ;;  %v1711_v30 = vpop.f32.mrb[3].mxu0 }
 0x17b   :  { %1133 = vst.msk [vmem:[#allocation3 + $0x8] sm:$0xff] %vm1131_vm3, %v1731_v29 }
 0x17e   :  { %v1090_v31 = vpop.f32.mrb[4].mxu0 }
 0x17f   :  { %v1732_v32 = vadd.f32 %v1090_v31, %v480_v18  ;;  %v1714_v33 = vpop.f32.mrb[5].mxu0 }
 0x180   :  { %v2139_v34 = vld [vmem:[#allocation3] sm:$0xff]  ;;  %v1093_v35 = vpop.f32.mrb[6].mxu0 }
 0x181   :  { %1134 = vst.msk [vmem:[#allocation3 + $0x10] sm:$0xff] %vm1131_vm3, %v1732_v32  ;;  %v1733_v36 = vadd.f32 %v1093_v35, %v483_v20  ;;  %v1715_v37 = vpop.f32.mrb[7].mxu0  ;;  %v1151_v38 = vmul.f32 %v2139_v34, %v2139_v34  ;;  %v1143_v39 = vsel %vm1131_vm3, %v2139_v34, 0.0 }
 0x182   :  { %v1144_v42 = vrot.slane %v1143_v39, 4 }
 0x183   :  { %1135 = vst.msk [vmem:[#allocation3 + $0x18] sm:$0xff] %vm1131_vm3, %v1733_v36  ;;  %v1152_v43 = vsel %vm1131_vm3, %v1151_v38, 0.0 }
 0x184   :  { %v1153_v54 = vrot.slane %v1152_v43, 4  ;;  %v1145_v57 = vadd.f32 %v1144_v42, %v1143_v39 }
 0x185   :  { %v618_v40 = vpop.f32.mrb[12].mxu1 }
 0x186   :  { %v1098_v41 = vpop.f32.mrb[8].mxu0  ;;  %v1634_v45 = vpop.f32.mrb[13].mxu1  ;;  %v1154_v3 = vadd.f32 %v1153_v54, %v1152_v43  ;;  %v1146_v9 = vrot.slane %v1145_v57, 2 }
 0x187   :  { %v1734_v44 = vadd.f32 %v1098_v41, %v488_v22  ;;  %v1718_v46 = vpop.f32.mrb[9].mxu0  ;;  %v621_v48 = vpop.f32.mrb[14].mxu1 }
 0x188   :  { %v2148_v47 = vld [vmem:[#allocation3 + $0xa] sm:$0xff]  ;;  %v1101_v49 = vpop.f32.mrb[10].mxu0  ;;  %v1635_v1 = vpop.f32.mrb[15].mxu1  ;;  %v1155_v26 = vrot.slane %v1154_v3, 2  ;;  %v1147_v28 = vadd.f32 %v1146_v9, %v1145_v57 }
 0x189   :  { %v1161_v50 = vsel %vm1131_vm3, %v2148_v47, 0.0  ;;  %v1169_v51 = vmul.f32 %v2148_v47, %v2148_v47  ;;  %1136 = vst.msk [vmem:[#allocation3 + $0x20] sm:$0xff] %vm1131_vm3, %v1734_v44  ;;  %v1735_v52 = vadd.f32 %v1101_v49, %v491_v24  ;;  %v1719_v53 = vpop.f32.mrb[11].mxu0 }
 0x18a   :  { %v1162_v55 = vrot.slane %v1161_v50, 4  ;;  %v2155_v56 = vld [vmem:[#allocation3 + $0x14] sm:$0xff]  ;;  %v1156_v41 = vadd.f32 %v1155_v26, %v1154_v3  ;;  %v1148_v44 = vrot.slane %v1147_v28, 1 }
 0x18b   :  { %v1170_v58 = vsel %vm1131_vm3, %v1169_v51, 0.0  ;;  %v1179_v59 = vsel %vm1131_vm3, %v2155_v56, 0.0  ;;  %v1187_v60 = vmul.f32 %v2155_v56, %v2155_v56  ;;  %1137 = vst.msk [vmem:[#allocation3 + $0x28] sm:$0xff] %vm1131_vm3, %v1735_v52 }
 0x18c   :  { %v1163_v61 = vadd.f32 %v1162_v55, %v1161_v50  ;;  %v1171_v62 = vrot.slane %v1170_v58, 4  ;;  %v1180_v63 = vrot.slane %v1179_v59, 4 }
 0x18d   :  { %v1188_v2 = vsel %vm1131_vm3, %v1187_v60, 0.0  ;;  %v626_v7 = vpop.f32.mrb[16].mxu1  ;;  %v1157_v60 = vrot.slane %v1156_v41, 1 }
 0x18e   :  { %v1164_v4 = vrot.slane %v1163_v61, 2  ;;  %v1172_v5 = vadd.f32 %v1171_v62, %v1170_v58  ;;  %v1189_v6 = vrot.slane %v1188_v2, 4  ;;  %v1106_v8 = vpop.f32.mrb[12].mxu0  ;;  %v1181_v10 = vadd.f32 %v1180_v63, %v1179_v59  ;;  %v1638_v12 = vpop.f32.mrb[17].mxu1 }
 0x18f   :  { %v1736_v11 = vadd.f32 %v1106_v8, %v618_v40  ;;  %v1722_v13 = vpop.f32.mrb[13].mxu0  ;;  %v629_v18 = vpop.f32.mrb[18].mxu1 }
 0x190   :  { %v1165_v14 = vadd.f32 %v1164_v4, %v1163_v61  ;;  %v1173_v15 = vrot.slane %v1172_v5, 2  ;;  %v1190_v16 = vadd.f32 %v1189_v6, %v1188_v2  ;;  %v2164_v17 = vld [vmem:[#allocation3 + $0x1e] sm:$0xff]  ;;  %v1109_v19 = vpop.f32.mrb[14].mxu0  ;;  %v1182_v20 = vrot.slane %v1181_v10, 2  ;;  %v1639_v24 = vpop.f32.mrb[19].mxu1 }
 0x191   :  { %v1197_v21 = vsel %vm1131_vm3, %v2164_v17, 0.0  ;;  %v1205_v22 = vmul.f32 %v2164_v17, %v2164_v17  ;;  %1138 = vst.msk [vmem:[#allocation3 + $0x30] sm:$0xff] %vm1131_vm3, %v1736_v11  ;;  %v1737_v23 = vadd.f32 %v1109_v19, %v621_v48  ;;  %v1723_v25 = vpop.f32.mrb[15].mxu0  ;;  %v1149_v2 = vadd.f32 %v1148_v44, %v1147_v28 }
 0x192   :  { %v1198_v0 = vrot.slane %v1197_v21, 4  ;;  %v2171_v27 = vld [vmem:[#allocation3 + $0x28] sm:$0xff]  ;;  %v1166_v32 = vrot.slane %v1165_v14, 1  ;;  %v1174_v33 = vadd.f32 %v1173_v15, %v1172_v5  ;;  %v1191_v35 = vrot.slane %v1190_v16, 2 }
 0x193   :  { %v1206_v29 = vsel %vm1131_vm3, %v1205_v22, 0.0  ;;  %v1215_v30 = vsel %vm1131_vm3, %v2171_v27, 0.0  ;;  %v1223_v31 = vmul.f32 %v2171_v27, %v2171_v27  ;;  %1139 = vst.msk [vmem:[#allocation3 + $0x38] sm:$0xff] %vm1131_vm3, %v1737_v23  ;;  %v1183_v37 = vadd.f32 %v1182_v20, %v1181_v10 }
 0x194   :  { %v1199_v36 = vadd.f32 %v1198_v0, %v1197_v21  ;;  %v1207_v38 = vrot.slane %v1206_v29, 4  ;;  %v1216_v39 = vrot.slane %v1215_v30, 4  ;;  %v1167_v50 = vadd.f32 %v1166_v32, %v1165_v14 }
 0x195   :  { %v1224_v40 = vsel %vm1131_vm3, %v1223_v31, 0.0  ;;  %v1175_v51 = vrot.slane %v1174_v33, 1  ;;  %v1192_v52 = vadd.f32 %v1191_v35, %v1190_v16  ;;  %v1184_v54 = vrot.slane %v1183_v37, 1 }
 0x196   :  { %v1200_v42 = vrot.slane %v1199_v36, 2  ;;  %v1114_v43 = vpop.f32.mrb[16].mxu0  ;;  %v1208_v45 = vadd.f32 %v1207_v38, %v1206_v29  ;;  %v1217_v46 = vadd.f32 %v1216_v39, %v1215_v30  ;;  %v1225_v48 = vrot.slane %v1224_v40, 4 }
 0x197   :  { %v1726_v49 = vpop.f32.mrb[17].mxu0  ;;  %v1738_v1 = vadd.f32 %v1114_v43, %v626_v7  ;;  %v1176_v6 = vadd.f32 %v1175_v51, %v1174_v33  ;;  %v1168_v9 = vadd.f32 %v1167_v50, %v1149_v2  ;;  %v1185_v10 = vadd.f32 %v1184_v54, %v1183_v37 }
 0x198   :  { %v1117_v53 = vpop.f32.mrb[18].mxu0  ;;  %v1201_v55 = vadd.f32 %v1200_v42, %v1199_v36  ;;  %v1209_v57 = vrot.slane %v1208_v45, 2  ;;  %v1226_v58 = vadd.f32 %v1225_v48, %v1224_v40  ;;  %v1218_v61 = vrot.slane %v1217_v46, 2 }
 0x199   :  { %v1727_v59 = vpop.f32.mrb[19].mxu0  ;;  %1140 = vst.msk [vmem:[#allocation3 + $0x40] sm:$0xff] %vm1131_vm3, %v1738_v1  ;;  %v1739_v63 = vadd.f32 %v1117_v53, %v629_v18  ;;  %v1193_v11 = vrot.slane %v1192_v52, 1  ;;  %v1158_v13 = vadd.f32 %v1157_v60, %v1156_v41  ;;  %v1186_v23 = vadd.f32 %v1185_v10, %v1168_v9 }
 0x19a   :  { %v2180_v62 = vld [vmem:[#allocation3 + $0x32] sm:$0xff]  ;;  %v1210_v3 = vadd.f32 %v1209_v57, %v1208_v45  ;;  %v1227_v4 = vrot.slane %v1226_v58, 2  ;;  %v1202_v12 = vrot.slane %v1201_v55, 1  ;;  %v1219_v14 = vadd.f32 %v1218_v61, %v1217_v46 }
 0x19b   :  { %v1233_v5 = vsel %vm1131_vm3, %v2180_v62, 0.0  ;;  %v1241_v8 = vmul.f32 %v2180_v62, %v2180_v62  ;;  %1141 = vst.msk [vmem:[#allocation3 + $0x48] sm:$0xff] %vm1131_vm3, %v1739_v63  ;;  %v1177_v21 = vadd.f32 %v1176_v6, %v1158_v13  ;;  %v1194_v24 = vadd.f32 %v1193_v11, %v1192_v52 }
 0x19c   :  { %v1234_v7 = vrot.slane %v1233_v5, 4  ;;  %v1211_v18 = vrot.slane %v1210_v3, 1  ;;  %v1228_v19 = vadd.f32 %v1227_v4, %v1226_v58  ;;  %v1203_v25 = vadd.f32 %v1202_v12, %v1201_v55 }
 0x19d   :  { %v1242_v16 = vsel %vm1131_vm3, %v1241_v8, 0.0  ;;  %v1220_v28 = vrot.slane %v1219_v14, 1  ;;  %v1195_v46 = vadd.f32 %v1194_v24, %v1177_v21 }
 0x19e   :  { %v1235_v15 = vadd.f32 %v1234_v7, %v1233_v5  ;;  %v1243_v20 = vrot.slane %v1242_v16, 4  ;;  %v1212_v32 = vadd.f32 %v1211_v18, %v1210_v3  ;;  %v1229_v33 = vrot.slane %v1228_v19, 1 }
 0x19f   :  { %v1204_v48 = vadd.f32 %v1203_v25, %v1186_v23  ;;  %v1221_v49 = vadd.f32 %v1220_v28, %v1219_v14 }
 0x1a0   :  { %v1236_v22 = vrot.slane %v1235_v15, 2  ;;  %v1244_v26 = vadd.f32 %v1243_v20, %v1242_v16  ;;  %v2189_v0 = vld [vmem:[#allocation3 + $0x3c] sm:$0xff]  ;;  %v1213_v54 = vadd.f32 %v1212_v32, %v1195_v46  ;;  %v1230_v55 = vadd.f32 %v1229_v33, %v1228_v19  ;;  %v1342_v33 = vld [vmem:[%s2261_s2 + $0x10] sm:$0xff]  }
 0x1a1   :  { %v1251_v30 = vsel %vm1131_vm3, %v2189_v0, 0.0  ;;  %v1259_v31 = vmul.f32 %v2189_v0, %v2189_v0  ;;  %v1222_v63 = vadd.f32 %v1221_v49, %v1204_v48  ;;  %v1320_v32 = vld [vmem:[%s2261_s2 + $0x8] sm:$0xff]  }
 0x1a2   :  { %v1237_v29 = vadd.f32 %v1236_v22, %v1235_v15  ;;  %v1245_v35 = vrot.slane %v1244_v26, 2  ;;  %v1252_v36 = vrot.slane %v1251_v30, 4  ;;  %v2195_v37 = vld [vmem:[#allocation3 + $0x46] sm:$0xff]  ;;  %v1231_v7 = vadd.f32 %v1230_v55, %v1213_v54 }
 0x1a3   :  { %v1260_v39 = vsel %vm1131_vm3, %v1259_v31, 0.0  ;;  %v1269_v40 = vsel %vm1131_vm3, %v2195_v37, 0.0  ;;  %v1277_v41 = vmul.f32 %v2195_v37, %v2195_v37  ;;  %v1297_v31 = vld [vmem:[%s2261_s2] sm:$0xff]  }
 0x1a4   :  { %v1238_v38 = vrot.slane %v1237_v29, 1  ;;  %v1246_v42 = vadd.f32 %v1245_v35, %v1244_v26  ;;  %v1253_v43 = vadd.f32 %v1252_v36, %v1251_v30  ;;  %v1261_v44 = vrot.slane %v1260_v39, 4  ;;  %v2215_v35 = vld [vmem:[%s2261_s2 + $0x18] sm:$0xff]  }
 0x1a5   :  { %v1270_v45 = vrot.slane %v1269_v40, 4  ;;  %v1278_v50 = vsel %vm1131_vm3, %v1277_v41, 0.0  ;;  %v1298_v36 = vunpack.c.l.bf16 %v1297_v31  ;;  %v1332_v41 = vunpack.c.h.bf16 %v1320_v32 }
 0x1a6   :  { %v1247_v51 = vrot.slane %v1246_v42, 1  ;;  %v1254_v52 = vrot.slane %v1253_v43, 2  ;;  %v1262_v1 = vadd.f32 %v1261_v44, %v1260_v39  ;;  %v1279_v57 = vrot.slane %v1278_v50, 4 }
 0x1a7   :  { %v1271_v53 = vadd.f32 %v1270_v45, %v1269_v40  ;;  %v1239_v58 = vadd.f32 %v1238_v38, %v1237_v29  ;;  %v1310_v39 = vunpack.c.h.bf16 %v1297_v31  ;;  %v1321_v40 = vunpack.c.l.bf16 %v1320_v32 }
 0x1a8   :  { %v1255_v59 = vadd.f32 %v1254_v52, %v1253_v43  ;;  %v1263_v60 = vrot.slane %v1262_v1, 2  ;;  %v1280_v2 = vadd.f32 %v1279_v57, %v1278_v50  ;;  %v1248_v3 = vadd.f32 %v1247_v51, %v1246_v42 }
 0x1a9   :  { %v1272_v61 = vrot.slane %v1271_v53, 2  ;;  %v1240_v9 = vadd.f32 %v1239_v58, %v1222_v63  ;;  %v1343_v43 = vunpack.c.l.bf16 %v1342_v33  ;;  %v1354_v44 = vunpack.c.h.bf16 %v1342_v33 }
 0x1aa   :  { %v1256_v4 = vrot.slane %v1255_v59, 1  ;;  %v1264_v5 = vadd.f32 %v1263_v60, %v1262_v1  ;;  %v1281_v8 = vrot.slane %v1280_v2, 2  ;;  %v1249_v14 = vadd.f32 %v1248_v3, %v1231_v7 }
 0x1ab   :  { %v1273_v6 = vadd.f32 %v1272_v61, %v1271_v53  ;;  %v1365_v45 = vunpack.c.l.bf16 %v2215_v35  ;;  %v1376_v46 = vunpack.c.h.bf16 %v2215_v35 }
 0x1ac   :  { %v1257_v10 = vadd.f32 %v1256_v4, %v1255_v59  ;;  %v1265_v11 = vrot.slane %v1264_v5, 1  ;;  %v1282_v13 = vadd.f32 %v1281_v8, %v1280_v2 }
 0x1ad   :  { %v1274_v12 = vrot.slane %v1273_v6, 1 }
 0x1ae   :  { %v1258_v15 = vadd.f32 %v1257_v10, %v1240_v9  ;;  %v1266_v16 = vadd.f32 %v1265_v11, %v1264_v5  ;;  %v1283_v19 = vrot.slane %v1282_v13, 1 }
 0x1af   :  { %v1275_v18 = vadd.f32 %v1274_v12, %v1273_v6 }
 0x1b0   :  { %v1267_v20 = vadd.f32 %v1266_v16, %v1249_v14  ;;  %v1284_v22 = vadd.f32 %v1283_v19, %v1282_v13 }
 0x1b1   :  { %v1276_v21 = vadd.f32 %v1275_v18, %v1258_v15 }
 0x1b2   :  { %v1285_v24 = vadd.f32 %v1284_v22, %v1267_v20 }
 0x1b3   :  { %v1286_v23 = vmul.f32 0.015625, %v1276_v21 }
 0x1b4   :  { %v1287_v26 = vmul.f32 0.015625, %v1285_v24 }
 0x1b5   :  { %v1288_v25 = vmul.f32 %v1286_v23, %v1286_v23  ;;  %v1293_v38 = vsub.f32 0.0, %v1286_v23 }
 0x1b7   :  { %v1289_v28 = vsub.f32 %v1287_v26, %v1288_v25 }
 0x1b9   :  { %v1290_v29 = vmax.f32 %v1289_v28, 0.0 }
 0x1bb   :  { %v1291_v30 = vadd.f32 1e-05, %v1290_v29 }
 0x1bd   :  { %1891 = vrsqrt.f32 %v1291_v30 }
 0x1c7   :  { %v1892_v42 = vpop.eup %1891 }
 0x1c8   :  { %v1294_v48 = vmul.f32 %v1892_v42, %v1293_v38  ;;  %v1295_v49 = vmul.f32 %v1892_v42, %v2139_v34  ;;  %v1307_v50 = vmul.f32 %v1892_v42, %v2148_v47  ;;  %v1318_v51 = vmul.f32 %v1892_v42, %v2155_v56 }
 0x1c9   :  { %v1329_v52 = vmul.f32 %v1892_v42, %v2164_v17  ;;  %v1340_v1 = vmul.f32 %v1892_v42, %v2171_v27  ;;  %v1351_v53 = vmul.f32 %v1892_v42, %v2180_v62  ;;  %v1362_v54 = vmul.f32 %v1892_v42, %v2189_v0 }
 0x1ca   :  { %v1296_v55 = vadd.f32 %v1295_v49, %v1294_v48  ;;  %v1308_v57 = vadd.f32 %v1307_v50, %v1294_v48  ;;  %v1319_v58 = vadd.f32 %v1318_v51, %v1294_v48  ;;  %v1373_v59 = vmul.f32 %v1892_v42, %v2195_v37 }
 0x1cb   :  { %v1330_v60 = vadd.f32 %v1329_v52, %v1294_v48  ;;  %v1341_v34 = vadd.f32 %v1340_v1, %v1294_v48  ;;  %v1352_v61 = vadd.f32 %v1351_v53, %v1294_v48  ;;  %v1363_v63 = vadd.f32 %v1362_v54, %v1294_v48 }
 0x1cc   :  { %v1299_v47 = vadd.f32 %v1298_v36, %v1296_v55  ;;  %v1311_v2 = vadd.f32 %v1310_v39, %v1308_v57  ;;  %v1322_v56 = vadd.f32 %v1321_v40, %v1319_v58  ;;  %v1374_v3 = vadd.f32 %v1373_v59, %v1294_v48 }
 0x1cd   :  { %v1333_v17 = vadd.f32 %v1332_v41, %v1330_v60  ;;  %v1344_v4 = vadd.f32 %v1343_v43, %v1341_v34  ;;  %v1355_v27 = vadd.f32 %v1354_v44, %v1352_v61  ;;  %v1366_v5 = vadd.f32 %v1365_v45, %v1363_v63 }
 0x1ce   :  { %vm1300_vm5 = vcmp.ge.f32.partialorder %v1299_v47, 0.0  ;;  %v1301_v62 = vmul.f32 0.2, %v1299_v47  ;;  %vm1312_vm6 = vcmp.ge.f32.partialorder %v1311_v2, 0.0  ;;  %v1313_v0 = vmul.f32 0.2, %v1311_v2 }
 0x1cf   :  { %vm1323_vm7 = vcmp.ge.f32.partialorder %v1322_v56, 0.0  ;;  %v1324_v6 = vmul.f32 0.2, %v1322_v56  ;;  %vm1334_vm8 = vcmp.ge.f32.partialorder %v1333_v17, 0.0  ;;  %v1335_v37 = vmul.f32 0.2, %v1333_v17 }
 0x1d0   :  { %v1302_v7 = vsel %vm1300_vm5, %v1299_v47, %v1301_v62  ;;  %v1314_v8 = vsel %vm1312_vm6, %v1311_v2, %v1313_v0  ;;  %vm1345_vm9 = vcmp.ge.f32.partialorder %v1344_v4, 0.0  ;;  %v1346_v9 = vmul.f32 0.2, %v1344_v4 }
 0x1d1   :  { %v1303_v10 = vpack.c.bf16 %v1302_v7, %v1302_v7  ;;  %v1315_v11 = vpack.c.bf16 %v1314_v8, %v1314_v8  ;;  %v1325_v12 = vsel %vm1323_vm7, %v1322_v56, %v1324_v6  ;;  %v1336_v13 = vsel %vm1334_vm8, %v1333_v17, %v1335_v37 }
 0x1d2   :  { %v1326_v14 = vpack.c.bf16 %v1325_v12, %v1325_v12  ;;  %v1337_v15 = vpack.c.bf16 %v1336_v13, %v1336_v13  ;;  %v1347_v16 = vsel %vm1345_vm9, %v1344_v4, %v1346_v9  ;;  %vm1356_vm10 = vcmp.ge.f32.partialorder %v1355_v27, 0.0 }
 0x1d3   :  { %1305 = vst.msk [vmem:[%s2262_s3] sm:$0xf] %vm1304_vm4, %v1303_v10  ;;  %1316 = vst.msk [vmem:[%s2262_s3 + $0x4] sm:$0xf] %vm1304_vm4, %v1315_v11  ;;  %v1348_v18 = vpack.c.bf16 %v1347_v16, %v1347_v16  ;;  %v1357_v19 = vmul.f32 0.2, %v1355_v27  ;;  %v1377_v21 = vadd.f32 %v1376_v46, %v1374_v3 }
 0x1d4   :  { %vm1367_vm11 = vcmp.ge.f32.partialorder %v1366_v5, 0.0  ;;  %v1368_v20 = vmul.f32 0.2, %v1366_v5  ;;  %1327 = vst.msk [vmem:[%s2262_s3 + $0x8] sm:$0xf] %vm1304_vm4, %v1326_v14 }
 0x1d5   :  { %1338 = vst.msk [vmem:[%s2262_s3 + $0xc] sm:$0xf] %vm1304_vm4, %v1337_v15  ;;  %1349 = vst.msk [vmem:[%s2262_s3 + $0x10] sm:$0xf] %vm1304_vm4, %v1348_v18  ;;  %v1358_v22 = vsel %vm1356_vm10, %v1355_v27, %v1357_v19  ;;  %vm1378_vm12 = vcmp.ge.f32.partialorder %v1377_v21, 0.0 }
 0x1d6   :  { %v1369_v23 = vsel %vm1367_vm11, %v1366_v5, %v1368_v20  ;;  %v1359_v24 = vpack.c.bf16 %v1358_v22, %v1358_v22  ;;  %v1379_v26 = vmul.f32 0.2, %v1377_v21 }
 0x1d7   :  { %v1370_v25 = vpack.c.bf16 %v1369_v23, %v1369_v23 }
 0x1d8   :  { %1360 = vst.msk [vmem:[%s2262_s3 + $0x14] sm:$0xf] %vm1304_vm4, %v1359_v24  ;;  %v1380_v28 = vsel %vm1378_vm12, %v1377_v21, %v1379_v26 }
 0x1d9   :  { %1371 = vst.msk [vmem:[%s2262_s3 + $0x18] sm:$0xf] %vm1304_vm4, %v1370_v25  ;;  %v1381_v29 = vpack.c.bf16 %v1380_v28, %v1380_v28 }
 0x1db   :  { %1382 = vst.msk [vmem:[%s2262_s3 + $0x1c] sm:$0xf] %vm1304_vm4, %v1381_v29 }

</bundles_post_ra>
